<compile_context>
chip_gen: v6e
topology: v6e:2x2x1
jax: 0.10.0
libtpu: 0.0.40
codegen_flags: <defaults>
</compile_context>

<pallas_src>
import functools
import math

import jax
import jax.numpy as jnp
from jax.experimental import pallas as pl
from jax.experimental.pallas import tpu as pltpu

LN_EPS = 1e-12  # HF ViT LayerNorm eps


# ----------------------------- in-kernel helpers ------------------------------

def _layernorm(h, g, b):
    mu = jnp.mean(h, axis=-1, keepdims=True)
    var = jnp.mean(jnp.square(h - mu), axis=-1, keepdims=True)
    return (h - mu) * jax.lax.rsqrt(var + LN_EPS) * g + b


def _gelu_exact(x):
    # HF ViT hidden_act="gelu" -> exact erf GELU.
    return 0.5 * x * (1.0 + jax.lax.erf(x * (1.0 / math.sqrt(2.0))))


# --------------------------- patch-embedding kernel ---------------------------

def _patch_embed_kernel(xp_ref, pw_ref, bias_ref, out_ref):
    # xp: (B, S, C*P*P) with a zero CLS row, pw: (C*P*P, D) bf16, bias: (S, D).
    b, s, cpp = xp_ref.shape
    d = pw_ref.shape[1]
    emb = jnp.dot(xp_ref[...].reshape(b * s, cpp).astype(jnp.bfloat16),
                  pw_ref[...],
                  preferred_element_type=jnp.float32).reshape(b, s, d)
    out_ref[...] = emb + bias_ref[...]


# ----------------------------- fused encoder kernel ---------------------------

def _vit_encoder_kernel(
    heads,
    # inputs
    tok0_ref,
    ln1g_ref, ln1b_ref, wqkv_ref, bqkv_ref, wo_ref, bo_ref,
    ln2g_ref, ln2b_ref, w1_ref, b1_ref, w2_ref, b2_ref,
    fg_ref, fb_ref,
    # output
    out_ref,
    # scratch: resident token activations, persist across the layer grid axis
    tok_ref,
):
    layer = pl.program_id(1)
    bt, seq, hidden = tok_ref.shape
    head_dim = hidden // heads
    scale = 1.0 / math.sqrt(head_dim)

    def mm(a2d, w):
        # (M, K) f32 x (K, N) bf16 -> (M, N) f32: bf16 MXU operands, f32 acc.
        return jnp.dot(a2d.astype(jnp.bfloat16), w,
                       preferred_element_type=jnp.float32)

    # first layer step of this batch tile: load the token slab into scratch
    @pl.when(layer == 0)
    def _init():
        tok_ref[...] = tok0_ref[...]

    x = tok_ref[...]                                   # (bt, S, D) f32

    # ----------------- multi-head self-attention (pre-LN) --------------------
    h = _layernorm(x, ln1g_ref[...], ln1b_ref[...])
    qkv = mm(h.reshape(bt * seq, hidden), wqkv_ref[...])          # (bt*S, 3D)
    qkv = qkv.reshape(bt, seq, 3 * hidden) + bqkv_ref[...]

    # Heads split only for score/softmax/PV; static unroll keeps live softmax
    # state to one (bt, S, S) slab per head.
    ctx_heads = []
    for hh in range(heads):
        lo = hh * head_dim
        q_h = (qkv[:, :, lo:lo + head_dim] * scale).astype(jnp.bfloat16)
        k_h = qkv[:, :, hidden + lo:hidden + lo + head_dim].astype(jnp.bfloat16)
        v_h = qkv[:, :, 2 * hidden + lo:2 * hidden + lo + head_dim].astype(jnp.bfloat16)
        s = jnp.einsum("bqd,bkd->bqk", q_h, k_h,
                       preferred_element_type=jnp.float32)
        s = s - jnp.max(s, axis=-1, keepdims=True)
        p = jnp.exp(s)
        p = p * pl.reciprocal(jnp.sum(p, axis=-1, keepdims=True), approx=True)
        ctx_heads.append(jnp.einsum("bqk,bkd->bqd", p.astype(jnp.bfloat16), v_h,
                                    preferred_element_type=jnp.float32))
    ctx = jnp.concatenate(ctx_heads, axis=-1)          # (bt, S, D), col = h*hd+f

    attn = mm(ctx.reshape(bt * seq, hidden), wo_ref[...]) + bo_ref[...]
    x = x + attn.reshape(bt, seq, hidden)

    # ----------------------------------- MLP ---------------------------------
    # TODO(synk): at real ViT sizes (MLP=3072) tile this dim with a third grid
    # axis so w1/w2 blocks fit v7x's 64 MiB VMEM alongside double buffering.
    h2 = _layernorm(x, ln2g_ref[...], ln2b_ref[...])
    m = _gelu_exact(mm(h2.reshape(bt * seq, hidden), w1_ref[...]) + b1_ref[...])
    x = x + (mm(m, w2_ref[...]) + b2_ref[...]).reshape(bt, seq, hidden)
    tok_ref[...] = x

    # last layer step: final LayerNorm on the CLS row only
    @pl.when(layer == pl.num_programs(1) - 1)
    def _final():
        out_ref[...] = _layernorm(
            x[:, 0:1, :], fg_ref[...], fb_ref[...]).astype(out_ref.dtype)


# -------------------------------- wrapper / glue -------------------------------

_LAYER_ARG_NAMES = ("ln1_g", "ln1_b", "wqkv", "bqkv", "wo", "bo",
                    "ln2_g", "ln2_b", "w1", "b1", "w2", "b2")


@functools.partial(jax.jit, static_argnames=("patch", "heads", "batch_tile"))
def teacher_vit_forward(x, params, *, patch, heads, batch_tile=None):
    """x: (B, C, H, W) f32 -> (B, D) CLS embedding after the final LayerNorm."""
    B, C, H, W = x.shape
    nH, nW = H // patch, W // patch
    N = nH * nW
    S = N + 1
    D = params["patch_w"].shape[1]
    lp = params["layers"]
    L = lp["wq"].shape[0]
    cpp = C * patch * patch

    # Glue: unfold patches in (C, P, P) order (matches a Conv2d patch projection
    # weight (D, C, P, P) flattened to (C*P*P, D)); prepend a zero "CLS patch".
    xp = x.reshape(B, C, nH, patch, nW, patch)
    xp = xp.transpose(0, 2, 4, 1, 3, 5).reshape(B, N, cpp)
    xp = jnp.concatenate([jnp.zeros((B, 1, cpp), xp.dtype), xp], axis=1)

    # Token bias (S, D): row 0 = CLS + pos[0]; rows 1.. = pos[1:] + conv bias.
    tok_bias = jnp.concatenate(
        [params["cls"][0] + params["pos"][0, :1],
         params["pos"][0, 1:] + params["patch_b"]], axis=0)

    # ---- stage 1: patch projection + CLS + pos (tiny standalone kernel) -----
    tok0 = pl.pallas_call(
        _patch_embed_kernel,
        out_shape=jax.ShapeDtypeStruct((B, S, D), jnp.float32),
    )(xp, params["patch_w"].astype(jnp.bfloat16), tok_bias)

    # ---- stage 2: fused encoder -- grid = (batch_tiles, layers) --------------
    bf16 = jnp.bfloat16
    layer_map = {
        "ln1_g": lp["ln1_g"], "ln1_b": lp["ln1_b"],
        # fused QKV projection weight (L, D, 3D), bf16 in HBM
        "wqkv": jnp.concatenate([lp["wq"], lp["wk"], lp["wv"]], axis=-1).astype(bf16),
        "bqkv": jnp.concatenate([lp["bq"], lp["bk"], lp["bv"]], axis=-1),
        "wo": lp["wo"].astype(bf16), "bo": lp["bo"],
        "ln2_g": lp["ln2_g"], "ln2_b": lp["ln2_b"],
        "w1": lp["w1"].astype(bf16), "b1": lp["b1"],
        "w2": lp["w2"].astype(bf16), "b2": lp["b2"],
    }
    layer_args = [layer_map[k] for k in _LAYER_ARG_NAMES]

    if batch_tile is None:
        batch_tile = B if B % 2 else B // 2   # up to 2 batch tiles -> v7x's 2 TCs
    n_btiles = B // batch_tile

    def per_layer_spec(a):   # stacked on a leading layer axis, streamed per step
        nd = a.ndim
        return pl.BlockSpec((None,) + a.shape[1:],
                            lambda b, l: (l,) + (0,) * (nd - 1))

    in_specs = (
        [pl.BlockSpec((batch_tile, S, D), lambda b, l: (b, 0, 0))]   # token slab
        + [per_layer_spec(a) for a in layer_args]
        + [pl.BlockSpec((1, D), lambda b, l: (0, 0)),                # final LN g
           pl.BlockSpec((1, D), lambda b, l: (0, 0))]                # final LN b
    )

    out = pl.pallas_call(
        functools.partial(_vit_encoder_kernel, heads),
        out_shape=jax.ShapeDtypeStruct((B, 1, D), jnp.float32),
        grid=(n_btiles, L),
        in_specs=in_specs,
        out_specs=pl.BlockSpec((batch_tile, 1, D), lambda b, l: (b, 0, 0)),
        scratch_shapes=[pltpu.VMEM((batch_tile, S, D), jnp.float32)],
        compiler_params=pltpu.CompilerParams(
            dimension_semantics=("parallel", "arbitrary"),
            # Explicit VMEM budget: 2x buffered bf16 per-layer weights + token
            # scratch + output is far below this at any supported config here;
            # re-derive (and add MLP tiling) for D=768 / MLP=3072 on v7x.
            vmem_limit_bytes=32 * 1024 * 1024),
    )(tok0, *layer_args, params["final_g"], params["final_b"])
    return out.reshape(B, D)


# ---------------------------- parameter creation -------------------------------

def init_params(key, *, channels, patch, hidden, layers, heads, mlp, num_patches):
    del heads  # shapes do not depend on heads
    k = jax.random.split(key, 9)
    std = 0.02
    L = layers
    return {
        "patch_w": std * jax.random.normal(
            k[0], (channels * patch * patch, hidden), jnp.float32),
        "patch_b": jnp.zeros((1, hidden), jnp.float32),
        "cls": std * jax.random.normal(k[1], (1, 1, hidden), jnp.float32),
        "pos": std * jax.random.normal(
            k[2], (1, num_patches + 1, hidden), jnp.float32),
        "final_g": jnp.ones((1, hidden), jnp.float32),
        "final_b": jnp.zeros((1, hidden), jnp.float32),
        "layers": {
            "ln1_g": jnp.ones((L, 1, hidden), jnp.float32),
            "ln1_b": jnp.zeros((L, 1, hidden), jnp.float32),
            "wq": std * jax.random.normal(k[3], (L, hidden, hidden), jnp.float32),
            "bq": jnp.zeros((L, 1, hidden), jnp.float32),
            "wk": std * jax.random.normal(k[4], (L, hidden, hidden), jnp.float32),
            "bk": jnp.zeros((L, 1, hidden), jnp.float32),
            "wv": std * jax.random.normal(k[5], (L, hidden, hidden), jnp.float32),
            "bv": jnp.zeros((L, 1, hidden), jnp.float32),
            "wo": std * jax.random.normal(k[6], (L, hidden, hidden), jnp.float32),
            "bo": jnp.zeros((L, 1, hidden), jnp.float32),
            "ln2_g": jnp.ones((L, 1, hidden), jnp.float32),
            "ln2_b": jnp.zeros((L, 1, hidden), jnp.float32),
            "w1": std * jax.random.normal(k[7], (L, hidden, mlp), jnp.float32),
            "b1": jnp.zeros((L, 1, mlp), jnp.float32),
            "w2": std * jax.random.normal(k[8], (L, mlp, hidden), jnp.float32),
            "b2": jnp.zeros((L, 1, hidden), jnp.float32),
        },
    }


# ------------------------- pure-JAX reference (check) --------------------------

def _reference_forward(x, params, *, patch, heads):
    B, C, H, W = x.shape
    nH, nW = H // patch, W // patch
    N = nH * nW
    D = params["patch_w"].shape[1]
    hd = D // heads

    xp = x.reshape(B, C, nH, patch, nW, patch).transpose(0, 2, 4, 1, 3, 5)
    xp = xp.reshape(B, N, C * patch * patch)
    emb = xp @ params["patch_w"] + params["patch_b"]
    cls = jnp.broadcast_to(params["cls"], (B, 1, D))
    t = jnp.concatenate([cls, emb], axis=1) + params["pos"]

    def ln(h, g, b):
        mu = h.mean(-1, keepdims=True)
        var = ((h - mu) ** 2).mean(-1, keepdims=True)
        return (h - mu) / jnp.sqrt(var + LN_EPS) * g + b

    lp = params["layers"]
    for l in range(lp["wq"].shape[0]):
        h = ln(t, lp["ln1_g"][l], lp["ln1_b"][l])
        q = (h @ lp["wq"][l] + lp["bq"][l]).reshape(B, -1, heads, hd).transpose(0, 2, 1, 3)
        k = (h @ lp["wk"][l] + lp["bk"][l]).reshape(B, -1, heads, hd).transpose(0, 2, 1, 3)
        v = (h @ lp["wv"][l] + lp["bv"][l]).reshape(B, -1, heads, hd).transpose(0, 2, 1, 3)
        s = (q @ k.transpose(0, 1, 3, 2)) / math.sqrt(hd)
        p = jax.nn.softmax(s, axis=-1)
        o = (p @ v).transpose(0, 2, 1, 3).reshape(B, -1, D)
        t = t + o @ lp["wo"][l] + lp["bo"][l]
        h2 = ln(t, lp["ln2_g"][l], lp["ln2_b"][l])
        m = jax.nn.gelu(h2 @ lp["w1"][l] + lp["b1"][l], approximate=False)
        t = t + m @ lp["w2"][l] + lp["b2"][l]
    return ln(t[:, 0, :], params["final_g"], params["final_b"])


# ------------------------------------ main --------------------------------------

if __name__ == "__main__":
    # Tiny ViT config (shapes consistent with ViTModel forward semantics).
    B, C, IMG, PATCH = 2, 3, 16, 4
    HIDDEN, LAYERS, HEADS, MLP = 32, 2, 4, 64
    N_PATCHES = (IMG // PATCH) * (IMG // PATCH)

    key = jax.random.PRNGKey(0)
    k_x, k_p = jax.random.split(key)
    x = jax.random.normal(k_x, (B, C, IMG, IMG), jnp.float32)
    params = init_params(
        k_p, channels=C, patch=PATCH, hidden=HIDDEN, layers=LAYERS,
        heads=HEADS, mlp=MLP, num_patches=N_PATCHES,
    )

    out = teacher_vit_forward(x, params, patch=PATCH, heads=HEADS)
    out = jax.block_until_ready(out)
    assert out.shape == (B, HIDDEN), out.shape

    ref = _reference_forward(x, params, patch=PATCH, heads=HEADS)
    max_err = float(jnp.max(jnp.abs(out - ref)))
    assert max_err < 5e-2, f"kernel/reference mismatch: {max_err}"

    print("KERNEL_OK")
</pallas_src>

<mosaic_0001>
module attributes {stable_mosaic.version = 11 : i64} {
  func.func @_patch_embed_kernel(%arg0: memref<2x17x48xf32, #tpu.memory_space<vmem>>, %arg1: memref<48x32xbf16, #tpu.memory_space<vmem>>, %arg2: memref<17x32xf32, #tpu.memory_space<vmem>>, %arg3: memref<2x17x32xf32, #tpu.memory_space<vmem>>) attributes {dimension_semantics = [], scalar_prefetch = 0 : i64, scratch_operands = 0 : i64, tpu.core_type = #tpu.core_type<tc>} {
    %c0 = arith.constant 0 : index
    %c0_0 = arith.constant 0 : index
    %c0_1 = arith.constant 0 : index
    %0 = vector.load %arg0[%c0, %c0_0, %c0_1] : memref<2x17x48xf32, #tpu.memory_space<vmem>>, vector<2x17x48xf32>
    %1 = vector.shape_cast %0 : vector<2x17x48xf32> to vector<34x48xf32>
    %2 = arith.truncf %1 : vector<34x48xf32> to vector<34x48xbf16>
    %c0_2 = arith.constant 0 : index
    %c0_3 = arith.constant 0 : index
    %3 = vector.load %arg1[%c0_2, %c0_3] : memref<48x32xbf16, #tpu.memory_space<vmem>>, vector<48x32xbf16>
    %cst = arith.constant dense<0.000000e+00> : vector<34x32xf32>
    %4 = tpu.matmul %2, %3, %cst {dimension_numbers = #tpu.dot_dimension_numbers<[1], [0], [0], [1], [0, 0, 1, 1], [], []>} : vector<34x48xbf16>, vector<48x32xbf16>, vector<34x32xf32> -> vector<34x32xf32>
    %5 = vector.shape_cast %4 : vector<34x32xf32> to vector<2x17x32xf32>
    %c0_4 = arith.constant 0 : index
    %c0_5 = arith.constant 0 : index
    %6 = vector.load %arg2[%c0_4, %c0_5] : memref<17x32xf32, #tpu.memory_space<vmem>>, vector<17x32xf32>
    %7 = vector.shape_cast %6 : vector<17x32xf32> to vector<1x17x32xf32>
    %8 = vector.broadcast %7 : vector<1x17x32xf32> to vector<2x17x32xf32>
    %9 = arith.addf %5, %8 : vector<2x17x32xf32>
    %c0_6 = arith.constant 0 : index
    %c0_7 = arith.constant 0 : index
    %c0_8 = arith.constant 0 : index
    %10 = vector.load %arg3[%c0_6, %c0_7, %c0_8] : memref<2x17x32xf32, #tpu.memory_space<vmem>>, vector<2x17x32xf32>
    tpu.vector_store %arg3[%c0_6, %c0_7, %c0_8], %9 {strides = array<i32>} : memref<2x17x32xf32, #tpu.memory_space<vmem>>, vector<2x17x32xf32>,
    return
  }
}

module attributes {stable_mosaic.version = 11 : i64} {
  func.func @_vit_encoder_kernel(%arg0: i32, %arg1: i32, %arg2: memref<1x17x32xf32, #tpu.memory_space<vmem>>, %arg3: memref<1x1x32xf32, #tpu.memory_space<vmem>>, %arg4: memref<1x1x32xf32, #tpu.memory_space<vmem>>, %arg5: memref<1x32x96xbf16, #tpu.memory_space<vmem>>, %arg6: memref<1x1x96xf32, #tpu.memory_space<vmem>>, %arg7: memref<1x32x32xbf16, #tpu.memory_space<vmem>>, %arg8: memref<1x1x32xf32, #tpu.memory_space<vmem>>, %arg9: memref<1x1x32xf32, #tpu.memory_space<vmem>>, %arg10: memref<1x1x32xf32, #tpu.memory_space<vmem>>, %arg11: memref<1x32x64xbf16, #tpu.memory_space<vmem>>, %arg12: memref<1x1x64xf32, #tpu.memory_space<vmem>>, %arg13: memref<1x64x32xbf16, #tpu.memory_space<vmem>>, %arg14: memref<1x1x32xf32, #tpu.memory_space<vmem>>, %arg15: memref<1x32xf32, #tpu.memory_space<vmem>>, %arg16: memref<1x32xf32, #tpu.memory_space<vmem>>, %arg17: memref<1x1x32xf32, #tpu.memory_space<vmem>>, %arg18: memref<1x17x32xf32, #tpu.memory_space<vmem>>) attributes {dimension_semantics = [#tpu.dimension_semantics<parallel>, #tpu.dimension_semantics<arbitrary>], iteration_bounds = array<i64: 2, 2>, scalar_prefetch = 0 : i64, scratch_operands = 1 : i64, tpu.core_type = #tpu.core_type<tc>, window_params = [{transform_indices = @transform_0, window_bounds = array<i64: 1, 17, 32>}, {transform_indices = @transform_1, window_bounds = array<i64: 1, 1, 32>}, {transform_indices = @transform_2, window_bounds = array<i64: 1, 1, 32>}, {transform_indices = @transform_3, window_bounds = array<i64: 1, 32, 96>}, {transform_indices = @transform_4, window_bounds = array<i64: 1, 1, 96>}, {transform_indices = @transform_5, window_bounds = array<i64: 1, 32, 32>}, {transform_indices = @transform_6, window_bounds = array<i64: 1, 1, 32>}, {transform_indices = @transform_7, window_bounds = array<i64: 1, 1, 32>}, {transform_indices = @transform_8, window_bounds = array<i64: 1, 1, 32>}, {transform_indices = @transform_9, window_bounds = array<i64: 1, 32, 64>}, {transform_indices = @transform_10, window_bounds = array<i64: 1, 1, 64>}, {transform_indices = @transform_11, window_bounds = array<i64: 1, 64, 32>}, {transform_indices = @transform_12, window_bounds = array<i64: 1, 1, 32>}, {pipeline_mode = #tpu.pipeline_mode<synchronous>, transform_indices = @transform_13, window_bounds = array<i64: 1, 32>}, {pipeline_mode = #tpu.pipeline_mode<synchronous>, transform_indices = @transform_14, window_bounds = array<i64: 1, 32>}, {transform_indices = @transform_15, window_bounds = array<i64: 1, 1, 32>}]} {
    %c0_i32 = arith.constant 0 : i32
    %0 = arith.cmpi eq, %arg1, %c0_i32 : i32
    %1 = arith.extui %0 : i1 to i32
    %c0_i32_0 = arith.constant 0 : i32
    %2 = arith.cmpi ne, %1, %c0_i32_0 : i32
    scf.if %2 {
      %c0_79 = arith.constant 0 : index
      %c0_80 = arith.constant 0 : index
      %c0_81 = arith.constant 0 : index
      %198 = vector.load %arg2[%c0_79, %c0_80, %c0_81] : memref<1x17x32xf32, #tpu.memory_space<vmem>>, vector<1x17x32xf32>
      %c0_82 = arith.constant 0 : index
      %c0_83 = arith.constant 0 : index
      %c0_84 = arith.constant 0 : index
      %199 = vector.load %arg18[%c0_82, %c0_83, %c0_84] : memref<1x17x32xf32, #tpu.memory_space<vmem>>, vector<1x17x32xf32>
      tpu.vector_store %arg18[%c0_82, %c0_83, %c0_84], %198 {strides = array<i32>} : memref<1x17x32xf32, #tpu.memory_space<vmem>>, vector<1x17x32xf32>,
    } else {
    }
    %c0 = arith.constant 0 : index
    %c0_1 = arith.constant 0 : index
    %c0_2 = arith.constant 0 : index
    %3 = vector.load %arg18[%c0, %c0_1, %c0_2] : memref<1x17x32xf32, #tpu.memory_space<vmem>>, vector<1x17x32xf32>
    %c0_3 = arith.constant 0 : index
    %c0_4 = arith.constant 0 : index
    %c0_5 = arith.constant 0 : index
    %4 = vector.load %arg3[%c0_3, %c0_4, %c0_5] : memref<1x1x32xf32, #tpu.memory_space<vmem>>, vector<1x1x32xf32>
    %5 = vector.shape_cast %4 : vector<1x1x32xf32> to vector<1x32xf32>
    %c0_6 = arith.constant 0 : index
    %c0_7 = arith.constant 0 : index
    %c0_8 = arith.constant 0 : index
    %6 = vector.load %arg4[%c0_6, %c0_7, %c0_8] : memref<1x1x32xf32, #tpu.memory_space<vmem>>, vector<1x1x32xf32>
    %7 = vector.shape_cast %6 : vector<1x1x32xf32> to vector<1x32xf32>
    %cst = arith.constant dense<0.000000e+00> : vector<1x17xf32>
    %8 = vector.multi_reduction <add>, %3, %cst [2] : vector<1x17x32xf32> to vector<1x17xf32>
    %9 = vector.shape_cast %8 : vector<1x17xf32> to vector<1x17x1xf32>
    %cst_9 = arith.constant 3.200000e+01 : f32
    %10 = vector.broadcast %cst_9 : f32 to vector<1x17x1xf32>
    %11 = arith.divf %9, %10 : vector<1x17x1xf32>
    %12 = vector.broadcast %11 : vector<1x17x1xf32> to vector<1x17x32xf32>
    %13 = arith.subf %3, %12 : vector<1x17x32xf32>
    %14 = arith.mulf %13, %13 : vector<1x17x32xf32>
    %cst_10 = arith.constant dense<0.000000e+00> : vector<1x17xf32>
    %15 = vector.multi_reduction <add>, %14, %cst_10 [2] : vector<1x17x32xf32> to vector<1x17xf32>
    %16 = vector.shape_cast %15 : vector<1x17xf32> to vector<1x17x1xf32>
    %cst_11 = arith.constant 3.200000e+01 : f32
    %17 = vector.broadcast %cst_11 : f32 to vector<1x17x1xf32>
    %18 = arith.divf %16, %17 : vector<1x17x1xf32>
    %19 = vector.broadcast %11 : vector<1x17x1xf32> to vector<1x17x32xf32>
    %20 = arith.subf %3, %19 : vector<1x17x32xf32>
    %cst_12 = arith.constant 9.99999996E-13 : f32
    %21 = vector.broadcast %cst_12 : f32 to vector<1x17x1xf32>
    %22 = arith.addf %18, %21 : vector<1x17x1xf32>
    %23 = math.rsqrt %22 : vector<1x17x1xf32>
    %24 = vector.broadcast %23 : vector<1x17x1xf32> to vector<1x17x32xf32>
    %25 = arith.mulf %20, %24 : vector<1x17x32xf32>
    %26 = vector.shape_cast %5 : vector<1x32xf32> to vector<1x1x32xf32>
    %27 = vector.broadcast %26 : vector<1x1x32xf32> to vector<1x17x32xf32>
    %28 = arith.mulf %25, %27 : vector<1x17x32xf32>
    %29 = vector.shape_cast %7 : vector<1x32xf32> to vector<1x1x32xf32>
    %30 = vector.broadcast %29 : vector<1x1x32xf32> to vector<1x17x32xf32>
    %31 = arith.addf %28, %30 : vector<1x17x32xf32>
    %32 = vector.shape_cast %31 : vector<1x17x32xf32> to vector<17x32xf32>
    %c0_13 = arith.constant 0 : index
    %c0_14 = arith.constant 0 : index
    %c0_15 = arith.constant 0 : index
    %33 = vector.load %arg5[%c0_13, %c0_14, %c0_15] : memref<1x32x96xbf16, #tpu.memory_space<vmem>>, vector<1x32x96xbf16>
    %34 = vector.shape_cast %33 : vector<1x32x96xbf16> to vector<32x96xbf16>
    %35 = arith.truncf %32 : vector<17x32xf32> to vector<17x32xbf16>
    %cst_16 = arith.constant dense<0.000000e+00> : vector<17x96xf32>
    %36 = tpu.matmul %35, %34, %cst_16 {dimension_numbers = #tpu.dot_dimension_numbers<[1], [0], [0], [1], [0, 0, 1, 1], [], []>} : vector<17x32xbf16>, vector<32x96xbf16>, vector<17x96xf32> -> vector<17x96xf32>
    %37 = vector.shape_cast %36 : vector<17x96xf32> to vector<1x17x96xf32>
    %c0_17 = arith.constant 0 : index
    %c0_18 = arith.constant 0 : index
    %c0_19 = arith.constant 0 : index
    %38 = vector.load %arg6[%c0_17, %c0_18, %c0_19] : memref<1x1x96xf32, #tpu.memory_space<vmem>>, vector<1x1x96xf32>
    %39 = vector.shape_cast %38 : vector<1x1x96xf32> to vector<1x96xf32>
    %40 = vector.shape_cast %39 : vector<1x96xf32> to vector<1x1x96xf32>
    %41 = vector.broadcast %40 : vector<1x1x96xf32> to vector<1x17x96xf32>
    %42 = arith.addf %37, %41 : vector<1x17x96xf32>
    %43 = vector.extract_strided_slice %42 {offsets = [0, 0, 0], sizes = [1, 17, 8], strides = [1, 1, 1]} : vector<1x17x96xf32> to vector<1x17x8xf32>
    %cst_20 = arith.constant 0.353553385 : f32
    %44 = vector.broadcast %cst_20 : f32 to vector<1x17x8xf32>
    %45 = arith.mulf %43, %44 : vector<1x17x8xf32>
    %46 = arith.truncf %45 : vector<1x17x8xf32> to vector<1x17x8xbf16>
    %47 = vector.extract_strided_slice %42 {offsets = [0, 0, 32], sizes = [1, 17, 8], strides = [1, 1, 1]} : vector<1x17x96xf32> to vector<1x17x8xf32>
    %48 = arith.truncf %47 : vector<1x17x8xf32> to vector<1x17x8xbf16>
    %49 = vector.extract_strided_slice %42 {offsets = [0, 0, 64], sizes = [1, 17, 8], strides = [1, 1, 1]} : vector<1x17x96xf32> to vector<1x17x8xf32>
    %50 = arith.truncf %49 : vector<1x17x8xf32> to vector<1x17x8xbf16>
    "tpu.trace_start"() <{level = 10 : i32, message = "bqd,bkd->bqk"}> : () -> ()
    %cst_21 = arith.constant dense<0.000000e+00> : vector<1x17x17xf32>
    %51 = tpu.matmul %46, %48, %cst_21 {dimension_numbers = #tpu.dot_dimension_numbers<[2], [2], [1], [1], [0, 0, 0, 1, 1, 1], [0], [0]>} : vector<1x17x8xbf16>, vector<1x17x8xbf16>, vector<1x17x17xf32> -> vector<1x17x17xf32>
    "tpu.trace_stop"() : () -> ()
    %cst_22 = arith.constant dense<0xFF800000> : vector<1x17xf32>
    %52 = vector.multi_reduction <maximumf>, %51, %cst_22 [2] : vector<1x17x17xf32> to vector<1x17xf32>
    %53 = vector.shape_cast %52 : vector<1x17xf32> to vector<1x17x1xf32>
    %54 = vector.broadcast %53 : vector<1x17x1xf32> to vector<1x17x17xf32>
    %55 = arith.subf %51, %54 : vector<1x17x17xf32>
    %56 = math.exp %55 : vector<1x17x17xf32>
    %cst_23 = arith.constant dense<0.000000e+00> : vector<1x17xf32>
    %57 = vector.multi_reduction <add>, %56, %cst_23 [2] : vector<1x17x17xf32> to vector<1x17xf32>
    %58 = vector.shape_cast %57 : vector<1x17xf32> to vector<1x17x1xf32>
    %59 = tpu.reciprocal %58 {approx = true} : vector<1x17x1xf32> -> vector<1x17x1xf32>
    %60 = vector.broadcast %59 : vector<1x17x1xf32> to vector<1x17x17xf32>
    %61 = arith.mulf %56, %60 : vector<1x17x17xf32>
    %62 = arith.truncf %61 : vector<1x17x17xf32> to vector<1x17x17xbf16>
    "tpu.trace_start"() <{level = 10 : i32, message = "bqk,bkd->bqd"}> : () -> ()
    %cst_24 = arith.constant dense<0.000000e+00> : vector<1x17x8xf32>
    %63 = tpu.matmul %62, %50, %cst_24 {dimension_numbers = #tpu.dot_dimension_numbers<[2], [1], [1], [2], [0, 0, 0, 1, 1, 2], [0], [0]>} : vector<1x17x17xbf16>, vector<1x17x8xbf16>, vector<1x17x8xf32> -> vector<1x17x8xf32>
    "tpu.trace_stop"() : () -> ()
    %64 = vector.extract_strided_slice %42 {offsets = [0, 0, 8], sizes = [1, 17, 8], strides = [1, 1, 1]} : vector<1x17x96xf32> to vector<1x17x8xf32>
    %cst_25 = arith.constant 0.353553385 : f32
    %65 = vector.broadcast %cst_25 : f32 to vector<1x17x8xf32>
    %66 = arith.mulf %64, %65 : vector<1x17x8xf32>
    %67 = arith.truncf %66 : vector<1x17x8xf32> to vector<1x17x8xbf16>
    %68 = vector.extract_strided_slice %42 {offsets = [0, 0, 40], sizes = [1, 17, 8], strides = [1, 1, 1]} : vector<1x17x96xf32> to vector<1x17x8xf32>
    %69 = arith.truncf %68 : vector<1x17x8xf32> to vector<1x17x8xbf16>
    %70 = vector.extract_strided_slice %42 {offsets = [0, 0, 72], sizes = [1, 17, 8], strides = [1, 1, 1]} : vector<1x17x96xf32> to vector<1x17x8xf32>
    %71 = arith.truncf %70 : vector<1x17x8xf32> to vector<1x17x8xbf16>
    "tpu.trace_start"() <{level = 10 : i32, message = "bqd,bkd->bqk"}> : () -> ()
    %cst_26 = arith.constant dense<0.000000e+00> : vector<1x17x17xf32>
    %72 = tpu.matmul %67, %69, %cst_26 {dimension_numbers = #tpu.dot_dimension_numbers<[2], [2], [1], [1], [0, 0, 0, 1, 1, 1], [0], [0]>} : vector<1x17x8xbf16>, vector<1x17x8xbf16>, vector<1x17x17xf32> -> vector<1x17x17xf32>
    "tpu.trace_stop"() : () -> ()
    %cst_27 = arith.constant dense<0xFF800000> : vector<1x17xf32>
    %73 = vector.multi_reduction <maximumf>, %72, %cst_27 [2] : vector<1x17x17xf32> to vector<1x17xf32>
    %74 = vector.shape_cast %73 : vector<1x17xf32> to vector<1x17x1xf32>
    %75 = vector.broadcast %74 : vector<1x17x1xf32> to vector<1x17x17xf32>
    %76 = arith.subf %72, %75 : vector<1x17x17xf32>
    %77 = math.exp %76 : vector<1x17x17xf32>
    %cst_28 = arith.constant dense<0.000000e+00> : vector<1x17xf32>
    %78 = vector.multi_reduction <add>, %77, %cst_28 [2] : vector<1x17x17xf32> to vector<1x17xf32>
    %79 = vector.shape_cast %78 : vector<1x17xf32> to vector<1x17x1xf32>
    %80 = tpu.reciprocal %79 {approx = true} : vector<1x17x1xf32> -> vector<1x17x1xf32>
    %81 = vector.broadcast %80 : vector<1x17x1xf32> to vector<1x17x17xf32>
    %82 = arith.mulf %77, %81 : vector<1x17x17xf32>
    %83 = arith.truncf %82 : vector<1x17x17xf32> to vector<1x17x17xbf16>
    "tpu.trace_start"() <{level = 10 : i32, message = "bqk,bkd->bqd"}> : () -> ()
    %cst_29 = arith.constant dense<0.000000e+00> : vector<1x17x8xf32>
    %84 = tpu.matmul %83, %71, %cst_29 {dimension_numbers = #tpu.dot_dimension_numbers<[2], [1], [1], [2], [0, 0, 0, 1, 1, 2], [0], [0]>} : vector<1x17x17xbf16>, vector<1x17x8xbf16>, vector<1x17x8xf32> -> vector<1x17x8xf32>
    "tpu.trace_stop"() : () -> ()
    %85 = vector.extract_strided_slice %42 {offsets = [0, 0, 16], sizes = [1, 17, 8], strides = [1, 1, 1]} : vector<1x17x96xf32> to vector<1x17x8xf32>
    %cst_30 = arith.constant 0.353553385 : f32
    %86 = vector.broadcast %cst_30 : f32 to vector<1x17x8xf32>
    %87 = arith.mulf %85, %86 : vector<1x17x8xf32>
    %88 = arith.truncf %87 : vector<1x17x8xf32> to vector<1x17x8xbf16>
    %89 = vector.extract_strided_slice %42 {offsets = [0, 0, 48], sizes = [1, 17, 8], strides = [1, 1, 1]} : vector<1x17x96xf32> to vector<1x17x8xf32>
    %90 = arith.truncf %89 : vector<1x17x8xf32> to vector<1x17x8xbf16>
    %91 = vector.extract_strided_slice %42 {offsets = [0, 0, 80], sizes = [1, 17, 8], strides = [1, 1, 1]} : vector<1x17x96xf32> to vector<1x17x8xf32>
    %92 = arith.truncf %91 : vector<1x17x8xf32> to vector<1x17x8xbf16>
    "tpu.trace_start"() <{level = 10 : i32, message = "bqd,bkd->bqk"}> : () -> ()
    %cst_31 = arith.constant dense<0.000000e+00> : vector<1x17x17xf32>
    %93 = tpu.matmul %88, %90, %cst_31 {dimension_numbers = #tpu.dot_dimension_numbers<[2], [2], [1], [1], [0, 0, 0, 1, 1, 1], [0], [0]>} : vector<1x17x8xbf16>, vector<1x17x8xbf16>, vector<1x17x17xf32> -> vector<1x17x17xf32>
    "tpu.trace_stop"() : () -> ()
    %cst_32 = arith.constant dense<0xFF800000> : vector<1x17xf32>
    %94 = vector.multi_reduction <maximumf>, %93, %cst_32 [2] : vector<1x17x17xf32> to vector<1x17xf32>
    %95 = vector.shape_cast %94 : vector<1x17xf32> to vector<1x17x1xf32>
    %96 = vector.broadcast %95 : vector<1x17x1xf32> to vector<1x17x17xf32>
    %97 = arith.subf %93, %96 : vector<1x17x17xf32>
    %98 = math.exp %97 : vector<1x17x17xf32>
    %cst_33 = arith.constant dense<0.000000e+00> : vector<1x17xf32>
    %99 = vector.multi_reduction <add>, %98, %cst_33 [2] : vector<1x17x17xf32> to vector<1x17xf32>
    %100 = vector.shape_cast %99 : vector<1x17xf32> to vector<1x17x1xf32>
    %101 = tpu.reciprocal %100 {approx = true} : vector<1x17x1xf32> -> vector<1x17x1xf32>
    %102 = vector.broadcast %101 : vector<1x17x1xf32> to vector<1x17x17xf32>
    %103 = arith.mulf %98, %102 : vector<1x17x17xf32>
    %104 = arith.truncf %103 : vector<1x17x17xf32> to vector<1x17x17xbf16>
    "tpu.trace_start"() <{level = 10 : i32, message = "bqk,bkd->bqd"}> : () -> ()
    %cst_34 = arith.constant dense<0.000000e+00> : vector<1x17x8xf32>
    %105 = tpu.matmul %104, %92, %cst_34 {dimension_numbers = #tpu.dot_dimension_numbers<[2], [1], [1], [2], [0, 0, 0, 1, 1, 2], [0], [0]>} : vector<1x17x17xbf16>, vector<1x17x8xbf16>, vector<1x17x8xf32> -> vector<1x17x8xf32>
    "tpu.trace_stop"() : () -> ()
    %106 = vector.extract_strided_slice %42 {offsets = [0, 0, 24], sizes = [1, 17, 8], strides = [1, 1, 1]} : vector<1x17x96xf32> to vector<1x17x8xf32>
    %cst_35 = arith.constant 0.353553385 : f32
    %107 = vector.broadcast %cst_35 : f32 to vector<1x17x8xf32>
    %108 = arith.mulf %106, %107 : vector<1x17x8xf32>
    %109 = arith.truncf %108 : vector<1x17x8xf32> to vector<1x17x8xbf16>
    %110 = vector.extract_strided_slice %42 {offsets = [0, 0, 56], sizes = [1, 17, 8], strides = [1, 1, 1]} : vector<1x17x96xf32> to vector<1x17x8xf32>
    %111 = arith.truncf %110 : vector<1x17x8xf32> to vector<1x17x8xbf16>
    %112 = vector.extract_strided_slice %42 {offsets = [0, 0, 88], sizes = [1, 17, 8], strides = [1, 1, 1]} : vector<1x17x96xf32> to vector<1x17x8xf32>
    %113 = arith.truncf %112 : vector<1x17x8xf32> to vector<1x17x8xbf16>
    "tpu.trace_start"() <{level = 10 : i32, message = "bqd,bkd->bqk"}> : () -> ()
    %cst_36 = arith.constant dense<0.000000e+00> : vector<1x17x17xf32>
    %114 = tpu.matmul %109, %111, %cst_36 {dimension_numbers = #tpu.dot_dimension_numbers<[2], [2], [1], [1], [0, 0, 0, 1, 1, 1], [0], [0]>} : vector<1x17x8xbf16>, vector<1x17x8xbf16>, vector<1x17x17xf32> -> vector<1x17x17xf32>
    "tpu.trace_stop"() : () -> ()
    %cst_37 = arith.constant dense<0xFF800000> : vector<1x17xf32>
    %115 = vector.multi_reduction <maximumf>, %114, %cst_37 [2] : vector<1x17x17xf32> to vector<1x17xf32>
    %116 = vector.shape_cast %115 : vector<1x17xf32> to vector<1x17x1xf32>
    %117 = vector.broadcast %116 : vector<1x17x1xf32> to vector<1x17x17xf32>
    %118 = arith.subf %114, %117 : vector<1x17x17xf32>
    %119 = math.exp %118 : vector<1x17x17xf32>
    %cst_38 = arith.constant dense<0.000000e+00> : vector<1x17xf32>
    %120 = vector.multi_reduction <add>, %119, %cst_38 [2] : vector<1x17x17xf32> to vector<1x17xf32>
    %121 = vector.shape_cast %120 : vector<1x17xf32> to vector<1x17x1xf32>
    %122 = tpu.reciprocal %121 {approx = true} : vector<1x17x1xf32> -> vector<1x17x1xf32>
    %123 = vector.broadcast %122 : vector<1x17x1xf32> to vector<1x17x17xf32>
    %124 = arith.mulf %119, %123 : vector<1x17x17xf32>
    %125 = arith.truncf %124 : vector<1x17x17xf32> to vector<1x17x17xbf16>
    "tpu.trace_start"() <{level = 10 : i32, message = "bqk,bkd->bqd"}> : () -> ()
    %cst_39 = arith.constant dense<0.000000e+00> : vector<1x17x8xf32>
    %126 = tpu.matmul %125, %113, %cst_39 {dimension_numbers = #tpu.dot_dimension_numbers<[2], [1], [1], [2], [0, 0, 0, 1, 1, 2], [0], [0]>} : vector<1x17x17xbf16>, vector<1x17x8xbf16>, vector<1x17x8xf32> -> vector<1x17x8xf32>
    "tpu.trace_stop"() : () -> ()
    %127 = tpu.concatenate %63, %84, %105, %126 in 2 : vector<1x17x8xf32>, vector<1x17x8xf32>, vector<1x17x8xf32>, vector<1x17x8xf32> -> vector<1x17x32xf32>
    %128 = vector.shape_cast %127 : vector<1x17x32xf32> to vector<17x32xf32>
    %c0_40 = arith.constant 0 : index
    %c0_41 = arith.constant 0 : index
    %c0_42 = arith.constant 0 : index
    %129 = vector.load %arg7[%c0_40, %c0_41, %c0_42] : memref<1x32x32xbf16, #tpu.memory_space<vmem>>, vector<1x32x32xbf16>
    %130 = vector.shape_cast %129 : vector<1x32x32xbf16> to vector<32x32xbf16>
    %131 = arith.truncf %128 : vector<17x32xf32> to vector<17x32xbf16>
    %cst_43 = arith.constant dense<0.000000e+00> : vector<17x32xf32>
    %132 = tpu.matmul %131, %130, %cst_43 {dimension_numbers = #tpu.dot_dimension_numbers<[1], [0], [0], [1], [0, 0, 1, 1], [], []>} : vector<17x32xbf16>, vector<32x32xbf16>, vector<17x32xf32> -> vector<17x32xf32>
    %c0_44 = arith.constant 0 : index
    %c0_45 = arith.constant 0 : index
    %c0_46 = arith.constant 0 : index
    %133 = vector.load %arg8[%c0_44, %c0_45, %c0_46] : memref<1x1x32xf32, #tpu.memory_space<vmem>>, vector<1x1x32xf32>
    %134 = vector.shape_cast %133 : vector<1x1x32xf32> to vector<1x32xf32>
    %135 = vector.broadcast %134 : vector<1x32xf32> to vector<17x32xf32>
    %136 = arith.addf %132, %135 : vector<17x32xf32>
    %137 = vector.shape_cast %136 : vector<17x32xf32> to vector<1x17x32xf32>
    %138 = arith.addf %3, %137 : vector<1x17x32xf32>
    %c0_47 = arith.constant 0 : index
    %c0_48 = arith.constant 0 : index
    %c0_49 = arith.constant 0 : index
    %139 = vector.load %arg9[%c0_47, %c0_48, %c0_49] : memref<1x1x32xf32, #tpu.memory_space<vmem>>, vector<1x1x32xf32>
    %140 = vector.shape_cast %139 : vector<1x1x32xf32> to vector<1x32xf32>
    %c0_50 = arith.constant 0 : index
    %c0_51 = arith.constant 0 : index
    %c0_52 = arith.constant 0 : index
    %141 = vector.load %arg10[%c0_50, %c0_51, %c0_52] : memref<1x1x32xf32, #tpu.memory_space<vmem>>, vector<1x1x32xf32>
    %142 = vector.shape_cast %141 : vector<1x1x32xf32> to vector<1x32xf32>
    %cst_53 = arith.constant dense<0.000000e+00> : vector<1x17xf32>
    %143 = vector.multi_reduction <add>, %138, %cst_53 [2] : vector<1x17x32xf32> to vector<1x17xf32>
    %144 = vector.shape_cast %143 : vector<1x17xf32> to vector<1x17x1xf32>
    %cst_54 = arith.constant 3.200000e+01 : f32
    %145 = vector.broadcast %cst_54 : f32 to vector<1x17x1xf32>
    %146 = arith.divf %144, %145 : vector<1x17x1xf32>
    %147 = vector.broadcast %146 : vector<1x17x1xf32> to vector<1x17x32xf32>
    %148 = arith.subf %138, %147 : vector<1x17x32xf32>
    %149 = arith.mulf %148, %148 : vector<1x17x32xf32>
    %cst_55 = arith.constant dense<0.000000e+00> : vector<1x17xf32>
    %150 = vector.multi_reduction <add>, %149, %cst_55 [2] : vector<1x17x32xf32> to vector<1x17xf32>
    %151 = vector.shape_cast %150 : vector<1x17xf32> to vector<1x17x1xf32>
    %cst_56 = arith.constant 3.200000e+01 : f32
    %152 = vector.broadcast %cst_56 : f32 to vector<1x17x1xf32>
    %153 = arith.divf %151, %152 : vector<1x17x1xf32>
    %154 = vector.broadcast %146 : vector<1x17x1xf32> to vector<1x17x32xf32>
    %155 = arith.subf %138, %154 : vector<1x17x32xf32>
    %cst_57 = arith.constant 9.99999996E-13 : f32
    %156 = vector.broadcast %cst_57 : f32 to vector<1x17x1xf32>
    %157 = arith.addf %153, %156 : vector<1x17x1xf32>
    %158 = math.rsqrt %157 : vector<1x17x1xf32>
    %159 = vector.broadcast %158 : vector<1x17x1xf32> to vector<1x17x32xf32>
    %160 = arith.mulf %155, %159 : vector<1x17x32xf32>
    %161 = vector.shape_cast %140 : vector<1x32xf32> to vector<1x1x32xf32>
    %162 = vector.broadcast %161 : vector<1x1x32xf32> to vector<1x17x32xf32>
    %163 = arith.mulf %160, %162 : vector<1x17x32xf32>
    %164 = vector.shape_cast %142 : vector<1x32xf32> to vector<1x1x32xf32>
    %165 = vector.broadcast %164 : vector<1x1x32xf32> to vector<1x17x32xf32>
    %166 = arith.addf %163, %165 : vector<1x17x32xf32>
    %167 = vector.shape_cast %166 : vector<1x17x32xf32> to vector<17x32xf32>
    %c0_58 = arith.constant 0 : index
    %c0_59 = arith.constant 0 : index
    %c0_60 = arith.constant 0 : index
    %168 = vector.load %arg11[%c0_58, %c0_59, %c0_60] : memref<1x32x64xbf16, #tpu.memory_space<vmem>>, vector<1x32x64xbf16>
    %169 = vector.shape_cast %168 : vector<1x32x64xbf16> to vector<32x64xbf16>
    %170 = arith.truncf %167 : vector<17x32xf32> to vector<17x32xbf16>
    %cst_61 = arith.constant dense<0.000000e+00> : vector<17x64xf32>
    %171 = tpu.matmul %170, %169, %cst_61 {dimension_numbers = #tpu.dot_dimension_numbers<[1], [0], [0], [1], [0, 0, 1, 1], [], []>} : vector<17x32xbf16>, vector<32x64xbf16>, vector<17x64xf32> -> vector<17x64xf32>
    %c0_62 = arith.constant 0 : index
    %c0_63 = arith.constant 0 : index
    %c0_64 = arith.constant 0 : index
    %172 = vector.load %arg12[%c0_62, %c0_63, %c0_64] : memref<1x1x64xf32, #tpu.memory_space<vmem>>, vector<1x1x64xf32>
    %173 = vector.shape_cast %172 : vector<1x1x64xf32> to vector<1x64xf32>
    %174 = vector.broadcast %173 : vector<1x64xf32> to vector<17x64xf32>
    %175 = arith.addf %171, %174 : vector<17x64xf32>
    %cst_65 = arith.constant 5.000000e-01 : f32
    %176 = vector.broadcast %cst_65 : f32 to vector<17x64xf32>
    %177 = arith.mulf %176, %175 : vector<17x64xf32>
    %cst_66 = arith.constant 0.707106769 : f32
    %178 = vector.broadcast %cst_66 : f32 to vector<17x64xf32>
    %179 = arith.mulf %175, %178 : vector<17x64xf32>
    %180 = math.erf %179 : vector<17x64xf32>
    %cst_67 = arith.constant 1.000000e+00 : f32
    %181 = vector.broadcast %cst_67 : f32 to vector<17x64xf32>
    %182 = arith.addf %181, %180 : vector<17x64xf32>
    %183 = arith.mulf %177, %182 : vector<17x64xf32>
    %c0_68 = arith.constant 0 : index
    %c0_69 = arith.constant 0 : index
    %c0_70 = arith.constant 0 : index
    %184 = vector.load %arg13[%c0_68, %c0_69, %c0_70] : memref<1x64x32xbf16, #tpu.memory_space<vmem>>, vector<1x64x32xbf16>
    %185 = vector.shape_cast %184 : vector<1x64x32xbf16> to vector<64x32xbf16>
    %186 = arith.truncf %183 : vector<17x64xf32> to vector<17x64xbf16>
    %cst_71 = arith.constant dense<0.000000e+00> : vector<17x32xf32>
    %187 = tpu.matmul %186, %185, %cst_71 {dimension_numbers = #tpu.dot_dimension_numbers<[1], [0], [0], [1], [0, 0, 1, 1], [], []>} : vector<17x64xbf16>, vector<64x32xbf16>, vector<17x32xf32> -> vector<17x32xf32>
    %c0_72 = arith.constant 0 : index
    %c0_73 = arith.constant 0 : index
    %c0_74 = arith.constant 0 : index
    %188 = vector.load %arg14[%c0_72, %c0_73, %c0_74] : memref<1x1x32xf32, #tpu.memory_space<vmem>>, vector<1x1x32xf32>
    %189 = vector.shape_cast %188 : vector<1x1x32xf32> to vector<1x32xf32>
    %190 = vector.broadcast %189 : vector<1x32xf32> to vector<17x32xf32>
    %191 = arith.addf %187, %190 : vector<17x32xf32>
    %192 = vector.shape_cast %191 : vector<17x32xf32> to vector<1x17x32xf32>
    %193 = arith.addf %138, %192 : vector<1x17x32xf32>
    %c0_75 = arith.constant 0 : index
    %c0_76 = arith.constant 0 : index
    %c0_77 = arith.constant 0 : index
    %194 = vector.load %arg18[%c0_75, %c0_76, %c0_77] : memref<1x17x32xf32, #tpu.memory_space<vmem>>, vector<1x17x32xf32>
    tpu.vector_store %arg18[%c0_75, %c0_76, %c0_77], %193 {strides = array<i32>} : memref<1x17x32xf32, #tpu.memory_space<vmem>>, vector<1x17x32xf32>,
    %c1_i32 = arith.constant 1 : i32
    %195 = arith.cmpi eq, %arg1, %c1_i32 : i32
    %196 = arith.extui %195 : i1 to i32
    %c0_i32_78 = arith.constant 0 : i32
    %197 = arith.cmpi ne, %196, %c0_i32_78 : i32
    scf.if %197 {
      %198 = vector.extract_strided_slice %193 {offsets = [0, 0, 0], sizes = [1, 1, 32], strides = [1, 1, 1]} : vector<1x17x32xf32> to vector<1x1x32xf32>
      %c0_79 = arith.constant 0 : index
      %c0_80 = arith.constant 0 : index
      %199 = vector.load %arg15[%c0_79, %c0_80] : memref<1x32xf32, #tpu.memory_space<vmem>>, vector<1x32xf32>
      %c0_81 = arith.constant 0 : index
      %c0_82 = arith.constant 0 : index
      %200 = vector.load %arg16[%c0_81, %c0_82] : memref<1x32xf32, #tpu.memory_space<vmem>>, vector<1x32xf32>
      %cst_83 = arith.constant dense<0.000000e+00> : vector<1x1xf32>
      %201 = vector.multi_reduction <add>, %198, %cst_83 [2] : vector<1x1x32xf32> to vector<1x1xf32>
      %202 = vector.shape_cast %201 : vector<1x1xf32> to vector<1x1x1xf32>
      %cst_84 = arith.constant 3.200000e+01 : f32
      %203 = vector.broadcast %cst_84 : f32 to vector<1x1x1xf32>
      %204 = arith.divf %202, %203 : vector<1x1x1xf32>
      %205 = vector.broadcast %204 : vector<1x1x1xf32> to vector<1x1x32xf32>
      %206 = arith.subf %198, %205 : vector<1x1x32xf32>
      %207 = arith.mulf %206, %206 : vector<1x1x32xf32>
      %cst_85 = arith.constant dense<0.000000e+00> : vector<1x1xf32>
      %208 = vector.multi_reduction <add>, %207, %cst_85 [2] : vector<1x1x32xf32> to vector<1x1xf32>
      %209 = vector.shape_cast %208 : vector<1x1xf32> to vector<1x1x1xf32>
      %cst_86 = arith.constant 3.200000e+01 : f32
      %210 = vector.broadcast %cst_86 : f32 to vector<1x1x1xf32>
      %211 = arith.divf %209, %210 : vector<1x1x1xf32>
      %212 = vector.broadcast %204 : vector<1x1x1xf32> to vector<1x1x32xf32>
      %213 = arith.subf %198, %212 : vector<1x1x32xf32>
      %cst_87 = arith.constant 9.99999996E-13 : f32
      %214 = vector.broadcast %cst_87 : f32 to vector<1x1x1xf32>
      %215 = arith.addf %211, %214 : vector<1x1x1xf32>
      %216 = math.rsqrt %215 : vector<1x1x1xf32>
      %217 = vector.broadcast %216 : vector<1x1x1xf32> to vector<1x1x32xf32>
      %218 = arith.mulf %213, %217 : vector<1x1x32xf32>
      %219 = vector.shape_cast %199 : vector<1x32xf32> to vector<1x1x32xf32>
      %220 = arith.mulf %218, %219 : vector<1x1x32xf32>
      %221 = vector.shape_cast %200 : vector<1x32xf32> to vector<1x1x32xf32>
      %222 = arith.addf %220, %221 : vector<1x1x32xf32>
      %c0_88 = arith.constant 0 : index
      %c0_89 = arith.constant 0 : index
      %c0_90 = arith.constant 0 : index
      %223 = vector.load %arg17[%c0_88, %c0_89, %c0_90] : memref<1x1x32xf32, #tpu.memory_space<vmem>>, vector<1x1x32xf32>
      tpu.vector_store %arg17[%c0_88, %c0_89, %c0_90], %222 {strides = array<i32>} : memref<1x1x32xf32, #tpu.memory_space<vmem>>, vector<1x1x32xf32>,
    } else {
    }
    return
  }
  func.func @transform_0(%arg0: i32, %arg1: i32) -> (i32, i32, i32) {
    %c0_i32 = arith.constant 0 : i32
    %c0_i32_0 = arith.constant 0 : i32
    %c0_i32_1 = arith.constant 0 : i32
    return %arg0, %c0_i32, %c0_i32_0 : i32, i32, i32
  }
  func.func @transform_1(%arg0: i32, %arg1: i32) -> (i32, i32, i32) {
    %c0_i32 = arith.constant 0 : i32
    %c0_i32_0 = arith.constant 0 : i32
    %c0_i32_1 = arith.constant 0 : i32
    return %arg1, %c0_i32, %c0_i32_0 : i32, i32, i32
  }
  func.func @transform_2(%arg0: i32, %arg1: i32) -> (i32, i32, i32) {
    %c0_i32 = arith.constant 0 : i32
    %c0_i32_0 = arith.constant 0 : i32
    %c0_i32_1 = arith.constant 0 : i32
    return %arg1, %c0_i32, %c0_i32_0 : i32, i32, i32
  }
  func.func @transform_3(%arg0: i32, %arg1: i32) -> (i32, i32, i32) {
    %c0_i32 = arith.constant 0 : i32
    %c0_i32_0 = arith.constant 0 : i32
    %c0_i32_1 = arith.constant 0 : i32
    return %arg1, %c0_i32, %c0_i32_0 : i32, i32, i32
  }
  func.func @transform_4(%arg0: i32, %arg1: i32) -> (i32, i32, i32) {
    %c0_i32 = arith.constant 0 : i32
    %c0_i32_0 = arith.constant 0 : i32
    %c0_i32_1 = arith.constant 0 : i32
    return %arg1, %c0_i32, %c0_i32_0 : i32, i32, i32
  }
  func.func @transform_5(%arg0: i32, %arg1: i32) -> (i32, i32, i32) {
    %c0_i32 = arith.constant 0 : i32
    %c0_i32_0 = arith.constant 0 : i32
    %c0_i32_1 = arith.constant 0 : i32
    return %arg1, %c0_i32, %c0_i32_0 : i32, i32, i32
  }
  func.func @transform_6(%arg0: i32, %arg1: i32) -> (i32, i32, i32) {
    %c0_i32 = arith.constant 0 : i32
    %c0_i32_0 = arith.constant 0 : i32
    %c0_i32_1 = arith.constant 0 : i32
    return %arg1, %c0_i32, %c0_i32_0 : i32, i32, i32
  }
  func.func @transform_7(%arg0: i32, %arg1: i32) -> (i32, i32, i32) {
    %c0_i32 = arith.constant 0 : i32
    %c0_i32_0 = arith.constant 0 : i32
    %c0_i32_1 = arith.constant 0 : i32
    return %arg1, %c0_i32, %c0_i32_0 : i32, i32, i32
  }
  func.func @transform_8(%arg0: i32, %arg1: i32) -> (i32, i32, i32) {
    %c0_i32 = arith.constant 0 : i32
    %c0_i32_0 = arith.constant 0 : i32
    %c0_i32_1 = arith.constant 0 : i32
    return %arg1, %c0_i32, %c0_i32_0 : i32, i32, i32
  }
  func.func @transform_9(%arg0: i32, %arg1: i32) -> (i32, i32, i32) {
    %c0_i32 = arith.constant 0 : i32
    %c0_i32_0 = arith.constant 0 : i32
    %c0_i32_1 = arith.constant 0 : i32
    return %arg1, %c0_i32, %c0_i32_0 : i32, i32, i32
  }
  func.func @transform_10(%arg0: i32, %arg1: i32) -> (i32, i32, i32) {
    %c0_i32 = arith.constant 0 : i32
    %c0_i32_0 = arith.constant 0 : i32
    %c0_i32_1 = arith.constant 0 : i32
    return %arg1, %c0_i32, %c0_i32_0 : i32, i32, i32
  }
  func.func @transform_11(%arg0: i32, %arg1: i32) -> (i32, i32, i32) {
    %c0_i32 = arith.constant 0 : i32
    %c0_i32_0 = arith.constant 0 : i32
    %c0_i32_1 = arith.constant 0 : i32
    return %arg1, %c0_i32, %c0_i32_0 : i32, i32, i32
  }
  func.func @transform_12(%arg0: i32, %arg1: i32) -> (i32, i32, i32) {
    %c0_i32 = arith.constant 0 : i32
    %c0_i32_0 = arith.constant 0 : i32
    %c0_i32_1 = arith.constant 0 : i32
    return %arg1, %c0_i32, %c0_i32_0 : i32, i32, i32
  }
  func.func @transform_13(%arg0: i32, %arg1: i32) -> (i32, i32) {
    %c0_i32 = arith.constant 0 : i32
    %c0_i32_0 = arith.constant 0 : i32
    %c0_i32_1 = arith.constant 0 : i32
    return %c0_i32, %c0_i32_0 : i32, i32
  }
  func.func @transform_14(%arg0: i32, %arg1: i32) -> (i32, i32) {
    %c0_i32 = arith.constant 0 : i32
    %c0_i32_0 = arith.constant 0 : i32
    %c0_i32_1 = arith.constant 0 : i32
    return %c0_i32, %c0_i32_0 : i32, i32
  }
  func.func @transform_15(%arg0: i32, %arg1: i32) -> (i32, i32, i32) {
    %c0_i32 = arith.constant 0 : i32
    %c0_i32_0 = arith.constant 0 : i32
    %c0_i32_1 = arith.constant 0 : i32
    return %arg0, %c0_i32, %c0_i32_0 : i32, i32, i32
  }
}

</mosaic_0001>

<bundles_post_ra>
// kernel: teacher_vit_forward.2
= control target key start
LH: loop header
LB: loop body
LE: loop exit
PB: predicated region body
PF: predicated region fallthrough
CT: control target
= control target key end

     0   :  { %v31_v0 = vlaneseq  ;;  %v1317_v1 = vmov 0.0   ;;  %v1318_v3 = vmov 1966171168   ;;  %vm1319_vm0 = vmmov 0   ;;  %s1649_s1 = inlined_call_operand.vmem [shape: bf16[48,32], index: 1, kind: input, shape index: {}]   ;;  %s1650_s0 = inlined_call_operand.vmem [shape: f32[2,17,48], index: 0, kind: input, shape index: {}]   ;;  %s1651_s2 = inlined_call_operand.vmem [shape: f32[17,32], index: 2, kind: input, shape index: {}]   ;;  %s1652_s3 = inlined_call_operand.vmem [shape: f32[2,17,32], index: 3, kind: output, shape index: {}]  }
   0x1   :  { %1281 = vmatprep.subr.bf16.mxu0 %v1317_v1  ;;  %v1308_v2 = vld [vmem:[%s1649_s1 + $0x10] sm:$0xff]   ;;  %1299 = vmatprep.subr.bf16.mxu1 %v1317_v1  ;;  %v29_v4 = vunpack.c.l.s4 %v1318_v3  ;;  %v1309_v6 = vld [vmem:[%s1649_s1 + $0x8] sm:$0xff]   ;;  %v15_v8 = vld [vmem:[%s1650_s0] sm:$0xff]  ;;  %vm494_vm1 = vcmask 392192   ;;  %vm1253_vm2 = vcmask 253952   ;;  %vm1250_vm3 = vcmask 261120  }
   0x2   :  { %1287 = vmatprep.mubr.msk.bf16.mxu0 %vm1319_vm0, %v1317_v1  ;;  %v32_v5 = vshrl.u32 %v31_v0, 7  ;;  %1291 = vmatprep.mubr.msk.bf16.mxu1 %vm1319_vm0, %v1317_v1  ;;  %v16_v9 = vld [vmem:[%s1650_s0 + $0x8] sm:$0xff]  ;;  %v27_v10 = vcombine.high %v15_v8, %v15_v8  ;;  %v1365_v13 = vld.sshfl [vmem:[%s1650_s0 + $0x10] sm:$0x1 pattern:$0x75316420] }
   0x3   :  { %1282 = vmatpush3.bf16.msra.mxu0 %v1308_v2  ;;  %1302 = vmatpush3.bf16.msra.mxu1 %v1308_v2  ;;  %v30_v7 = vunpack.c.0.s8 %v29_v4  ;;  %v76_v12 = vcombine.high %v16_v9, %v16_v9  ;;  %v18_v14 = vld [vmem:[%s1650_s0 + $0x18] sm:$0xff]  ;;  %v1373_v15 = vld [vmem:[%s1650_s0 + $0x20] sm:$0xff] }
   0x4   :  { %1283 = vmatprep.subr.bf16.mxu0 %v1317_v1  ;;  %1300 = vmatprep.subr.bf16.mxu1 %v1317_v1  ;;  %v139_v16 = vcombine.high %v18_v14, %v18_v14  ;;  %v188_v17 = vcombine.high %v1373_v15, %v1373_v15  ;;  %v1310_v18 = vld [vmem:[%s1649_s1] sm:$0xff]  }
   0x5   :  { %v1360_v11 = vsub.s32 %v30_v7, %v32_v5 }
   0x7   :  { %1284 = vmatpush3.bf16.msra.mxu0 %v1309_v6  ;;  %1303 = vmatpush3.bf16.msra.mxu1 %v1309_v6  ;;  %v34_v19 = vrot.slane %v15_v8, %v1360_v11  ;;  %v41_v20 = vrot.slane %v27_v10, %v1360_v11  ;;  %v83_v21 = vrot.slane %v16_v9, %v1360_v11 }
   0x8   :  { %1285 = vmatprep.subr.bf16.mxu0 %v1317_v1  ;;  %1301 = vmatprep.subr.bf16.mxu1 %v1317_v1  ;;  %v90_v22 = vrot.slane %v76_v12, %v1360_v11  ;;  %v138_v23 = vrot.slane %v1365_v13, %v1360_v11  ;;  %v146_v24 = vrot.slane %v18_v14, %v1360_v11 }
   0x9   :  { %v42_v25 = vcombine.high %v34_v19, %v34_v19  ;;  %v43_v26 = vcombine.high %v41_v20, %v41_v20  ;;  %v50_v27 = vrot.slane %v34_v19, %v1360_v11  ;;  %v57_v28 = vrot.slane %v41_v20, %v1360_v11 }
   0xa   :  { %v91_v29 = vcombine.high %v83_v21, %v83_v21  ;;  %v92_v30 = vcombine.high %v90_v22, %v90_v22  ;;  %v99_v31 = vrot.slane %v83_v21, %v1360_v11  ;;  %v106_v32 = vrot.slane %v90_v22, %v1360_v11 }
   0xb   :  { %1286 = vmatpush3.bf16.msra.mxu0 %v1310_v18  ;;  %1304 = vmatpush3.bf16.msra.mxu1 %v1310_v18  ;;  %v64_v33 = vrot.slane %v42_v25, %v1360_v11  ;;  %v71_v34 = vrot.slane %v43_v26, %v1360_v11  ;;  %v153_v35 = vrot.slane %v139_v16, %v1360_v11 }
   0xc   :  { %v113_v36 = vrot.slane %v91_v29, %v1360_v11  ;;  %v120_v37 = vrot.slane %v92_v30, %v1360_v11  ;;  %v154_v38 = vcombine.high %v146_v24, %v146_v24  ;;  %v162_v39 = vrot.slane %v146_v24, %v1360_v11 }
   0xd   :  { %v251_v40 = vcombine.low %v50_v27, %v64_v33  ;;  %v1264_v41 = vcombine.high %v50_v27, %v64_v33  ;;  %v253_v42 = vcombine.low %v57_v28, %v71_v34  ;;  %v1265_v43 = vcombine.high %v57_v28, %v71_v34 }
   0xe   :  { %v300_v44 = vcombine.low %v99_v31, %v113_v36  ;;  %v1266_v45 = vcombine.high %v99_v31, %v113_v36  ;;  %v302_v46 = vcombine.low %v106_v32, %v120_v37  ;;  %v1267_v47 = vcombine.high %v106_v32, %v120_v37 }
   0xf   :  { %v261_v48 = vrot.slane %v251_v40, %v1360_v11  ;;  %v268_v49 = vrot.slane %v1264_v41, %v1360_v11  ;;  %v275_v50 = vrot.slane %v253_v42, %v1360_v11  ;;  %v282_v51 = vrot.slane %v1265_v43, %v1360_v11 }
  0x10   :  { %v310_v52 = vrot.slane %v300_v44, %v1360_v11  ;;  %v317_v53 = vrot.slane %v1266_v45, %v1360_v11  ;;  %v324_v54 = vrot.slane %v302_v46, %v1360_v11  ;;  %v331_v55 = vrot.slane %v1267_v47, %v1360_v11 }
  0x11   :  { %v283_v56 = vcombine.low %v261_v48, %v268_v49  ;;  %v284_v57 = vcombine.low %v275_v50, %v282_v51  ;;  %v155_v58 = vcombine.high %v153_v35, %v153_v35  ;;  %v169_v59 = vrot.slane %v153_v35, %v1360_v11 }
  0x12   :  { %v332_v60 = vcombine.low %v310_v52, %v317_v53  ;;  %v333_v61 = vcombine.low %v324_v54, %v331_v55  ;;  %v176_v62 = vrot.slane %v154_v38, %v1360_v11  ;;  %v184_v63 = vcombine.high %v162_v39, %v162_v39 }
  0x13   :  { %v291_v0 = vrot.slane %v283_v56, %v1360_v11  ;;  %v298_v2 = vrot.slane %v284_v57, %v1360_v11  ;;  %v183_v3 = vrot.slane %v155_v58, %v1360_v11  ;;  %v185_v4 = vcombine.high %v169_v59, %v169_v59  ;;  %v817_v58 = vld [vmem:[%s1651_s2] sm:$0xff] }
  0x14   :  { %v340_v5 = vrot.slane %v332_v60, %v1360_v11  ;;  %v347_v6 = vrot.slane %v333_v61, %v1360_v11  ;;  %v186_v7 = vcombine.high %v176_v62, %v176_v62  ;;  %v195_v8 = vrot.slane %v1373_v15, %v1360_v11  ;;  %v1263_v15 = vld.sshfl [vmem:[%s1650_s0 + $0x28] sm:$0x1 pattern:$0x75316420] }
  0x15   :  { %v299_v9 = vcombine.low %v291_v0, %v298_v2  ;;  %v187_v10 = vcombine.high %v183_v3, %v183_v3  ;;  %v202_v12 = vrot.slane %v188_v17, %v1360_v11  ;;  %v349_v13 = vcombine.low %v138_v23, %v162_v39 }
  0x16   :  { %v348_v14 = vcombine.low %v340_v5, %v347_v6  ;;  %v203_v16 = vcombine.high %v195_v8, %v195_v8  ;;  %v211_v18 = vrot.slane %v195_v8, %v1360_v11  ;;  %v350_v19 = vcombine.low %v176_v62, %v184_v63  ;;  %v818_v62 = vld [vmem:[%s1651_s2 + $0x8] sm:$0xff] }
  0x17   :  { %v204_v20 = vcombine.high %v202_v12, %v202_v12  ;;  %v218_v21 = vrot.slane %v202_v12, %v1360_v11  ;;  %v351_v22 = vcombine.low %v186_v7, %v169_v59  ;;  %v352_v24 = vcombine.low %v183_v3, %v185_v4 }
  0x18   :  { %v467_v25 = vpack.c.bf16 %v348_v14, %v299_v9  ;;  %v225_v26 = vrot.slane %v203_v16, %v1360_v11  ;;  %v233_v27 = vcombine.high %v211_v18, %v211_v18  ;;  %v359_v28 = vrot.slane %v349_v13, %v1360_v11 }
  0x19   :  { %v232_v17 = vrot.slane %v204_v20, %v1360_v11  ;;  %v234_v23 = vcombine.high %v218_v21, %v218_v21  ;;  %v366_v29 = vrot.slane %v350_v19, %v1360_v11  ;;  %v373_v30 = vrot.slane %v351_v22, %v1360_v11 }
  0x1a   :  { %1288 = vmatmul.mubr.msk.bf16.vlgmr.msra.gmra.mxu0 %vm494_vm1, %v467_v25  ;;  %v235_v31 = vcombine.high %v225_v26, %v225_v26  ;;  %v380_v32 = vrot.slane %v352_v24, %v1360_v11  ;;  %v398_v33 = vcombine.low %v187_v10, %v211_v18  ;;  %v399_v34 = vcombine.low %v225_v26, %v233_v27 }
  0x1b   :  { %v381_v35 = vcombine.low %v359_v28, %v366_v29  ;;  %v401_v36 = vcombine.low %v232_v17, %v234_v23  ;;  %v236_v37 = vcombine.high %v232_v17, %v232_v17  ;;  %v250_v38 = vrot.slane %v1263_v15, %v1360_v11 }
  0x1c   :  { %v382_v39 = vcombine.low %v373_v30, %v380_v32  ;;  %v400_v40 = vcombine.low %v235_v31, %v218_v21  ;;  %v408_v41 = vrot.slane %v398_v33, %v1360_v11  ;;  %v415_v42 = vrot.slane %v399_v34, %v1360_v11 }
  0x1d   :  { %v429_v43 = vrot.slane %v401_v36, %v1360_v11  ;;  %v389_v44 = vrot.slane %v381_v35, %v1360_v11  ;;  %v447_v50 = vcombine.low %v236_v37, %v250_v38  ;;  %v823_v59 = vcombine.high %v817_v58, %v817_v58 }
  0x1e   :  { %v396_v45 = vrot.slane %v382_v39, %v1360_v11  ;;  %v422_v46 = vrot.slane %v400_v40, %v1360_v11  ;;  %v430_v47 = vcombine.low %v408_v41, %v415_v42  ;;  %v830_v60 = vrot.slane %v817_v58, %v1360_v11  ;;  %v1274_v42 = vld.sshfl [vmem:[%s1651_s2 + $0x10] sm:$0x1 pattern:$0x75316420] }
  0x1f   :  { %v454_v54 = vrot.slane %v447_v50, %v1360_v11  ;;  %v837_v61 = vrot.slane %v823_v59, %v1360_v11  ;;  %v879_v6 = vrot.slane %v818_v62, %v1360_v11 }
  0x20   :  { %v431_v48 = vcombine.low %v422_v46, %v429_v43  ;;  %v438_v49 = vrot.slane %v430_v47, %v1360_v11  ;;  %v397_v51 = vcombine.low %v389_v44, %v396_v45  ;;  %v838_v63 = vcombine.high %v830_v60, %v830_v60 }
  0x21   :  { %v461_v56 = vrot.slane %v454_v54, %v1360_v11  ;;  %v1456_v0 = vrot.slane %v830_v60, %v1360_v11  ;;  %v839_v2 = vcombine.high %v837_v61, %v837_v61  ;;  %v1459_v4 = vrot.slane %v837_v61, %v1360_v11 }
  0x22   :  { %v445_v52 = vrot.slane %v431_v48, %v1360_v11  ;;  %v1462_v5 = vrot.slane %v838_v63, %v1360_v11  ;;  %v887_v22 = vcombine.high %v879_v6, %v879_v6  ;;  %v1485_v24 = vrot.slane %v879_v6, %v1360_v11 }
  0x23   :  { %v469_v57 = vpack.c.bf16 %v461_v56, %v461_v56  ;;  %v1468_v9 = vcombine.high %v1456_v0, %v1456_v0  ;;  %v1474_v18 = vrot.slane %v839_v2, %v1360_v11  ;;  %v1478_v19 = vcombine.high %v1459_v4, %v1459_v4 }
  0x24   :  { %v446_v53 = vcombine.low %v438_v49, %v445_v52  ;;  %v1482_v20 = vcombine.high %v1462_v5, %v1462_v5  ;;  %v1505_v43 = vrot.slane %v887_v22, %v1360_v11 }
  0x25   :  { %v1510_v47 = vcombine.high %v1474_v18, %v1474_v18 }
  0x26   :  { %v468_v55 = vpack.c.bf16 %v446_v53, %v397_v51  ;;  %v1517_v53 = vrot.slane %v1274_v42, %v1360_v11  ;;  %v1534_v59 = vcombine.high %v1505_v43, %v1505_v43 }
  0x28   :  { %1292 = vmatmul.mubr.msk.bf16.vlgmr.msra.gmra.mxu1 %vm494_vm1, %v468_v55 }
  0x29   :  { %1295 = vmatprep.mubr.msk.bf16.mxu1 %vm1319_vm0, %v1317_v1  ;;  %v872_v1 = vcombine.high %v818_v62, %v818_v62 }
  0x2b   :  { %v886_v12 = vrot.slane %v872_v1, %v1360_v11 }
  0x2d   :  { %v888_v23 = vcombine.high %v886_v12, %v886_v12  ;;  %v1491_v29 = vrot.slane %v886_v12, %v1360_v11 }
  0x2f   :  { %v1514_v51 = vrot.slane %v888_v23, %v1360_v11  ;;  %v1530_v58 = vcombine.high %v1491_v29, %v1491_v29 }
  0x30   :  { %1296 = vmatmul.mubr.msk.bf16.gmra.mxu1 %vm494_vm1, %v469_v57  ;;  %v1526_v57 = vcombine.high %v1485_v24, %v1485_v24 }
  0xda   :  { %v538_v3 = vpop.f32.mrf.mxu0 }
  0xdb   :  { %v565_v7 = vcombine.high %v538_v3, %v538_v3  ;;  %v572_v8 = vrot.slane %v538_v3, %v1360_v11 }
  0xdc   :  { %v1289_v10 = vpop.f32.mrf.mxu0 }
  0xdd   :  { %v579_v13 = vrot.slane %v565_v7, %v1360_v11  ;;  %v580_v14 = vcombine.high %v572_v8, %v572_v8  ;;  %v588_v16 = vrot.slane %v572_v8, %v1360_v11  ;;  %v1542_v7 = vcombine.high %v1514_v51, %v1514_v51 }
  0xde   :  { %v541_v21 = vpop.f32.mrf.mxu0 }
  0xdf   :  { %v581_v25 = vcombine.high %v579_v13, %v579_v13  ;;  %v595_v26 = vrot.slane %v579_v13, %v1360_v11  ;;  %v602_v27 = vrot.slane %v580_v14, %v1360_v11  ;;  %v610_v28 = vcombine.high %v588_v16, %v588_v16 }
  0xe0   :  { %v614_v15 = vcombine.high %v541_v21, %v541_v21  ;;  %v621_v17 = vrot.slane %v541_v21, %v1360_v11  ;;  %v1290_v30 = vpop.f32.mrf.mxu0  ;;  %v952_v33 = vadd.f32 %v1456_v0, %v588_v16 }
  0xe1   :  { %v609_v31 = vrot.slane %v581_v25, %v1360_v11  ;;  %v612_v32 = vcombine.high %v602_v27, %v602_v27  ;;  %v953_v34 = vadd.f32 %v1462_v5, %v602_v27  ;;  %v954_v35 = vadd.f32 %v1468_v9, %v610_v28 }
  0xe2   :  { %v956_v36 = vadd.f32 %v1459_v4, %v595_v26  ;;  %v628_v37 = vrot.slane %v614_v15, %v1360_v11  ;;  %v629_v38 = vcombine.high %v621_v17, %v621_v17  ;;  %v611_v39 = vcombine.high %v595_v26, %v595_v26 }
  0xe3   :  { %v955_v40 = vadd.f32 %v1482_v20, %v612_v32  ;;  %v957_v41 = vadd.f32 %v1474_v18, %v609_v31  ;;  %v613_v44 = vcombine.high %v609_v31, %v609_v31  ;;  %v637_v46 = vrot.slane %v621_v17, %v1360_v11 }
  0xe4   :  { %v630_v45 = vcombine.high %v628_v37, %v628_v37  ;;  %v1020_v48 = vcombine.low %v952_v33, %v953_v34  ;;  %v651_v50 = vrot.slane %v629_v38, %v1360_v11  ;;  %v644_v54 = vrot.slane %v628_v37, %v1360_v11 }
  0xe5   :  { %v1021_v49 = vcombine.low %v954_v35, %v955_v40  ;;  %v1022_v52 = vcombine.low %v956_v36, %v957_v41  ;;  %v958_v56 = vadd.f32 %v1478_v19, %v611_v39  ;;  %v659_v62 = vcombine.high %v637_v46, %v637_v46 }
  0xe6   :  { %v1521_v55 = vrot.slane %v630_v45, %v1360_v11  ;;  %v661_v63 = vcombine.high %v651_v50, %v651_v50  ;;  %v959_v1 = vadd.f32 %v1510_v47, %v613_v44  ;;  %v1030_v2 = vrot.slane %v1020_v48, %v1360_v11 }
  0xe7   :  { %v1037_v60 = vrot.slane %v1021_v49, %v1360_v11  ;;  %v1044_v8 = vrot.slane %v1022_v52, %v1360_v11  ;;  %v660_v10 = vcombine.high %v644_v54, %v644_v54  ;;  %v960_v13 = vadd.f32 %v1485_v24, %v637_v46 }
  0xe8   :  { %v546_v61 = vpop.f32.mrf.mxu1  ;;  %v662_v12 = vcombine.high %v1521_v55, %v1521_v55  ;;  %v961_v25 = vadd.f32 %v1505_v43, %v651_v50  ;;  %v962_v27 = vadd.f32 %v1526_v57, %v659_v62  ;;  %v963_v28 = vadd.f32 %v1534_v59, %v661_v63 }
  0xe9   :  { %v663_v3 = vcombine.high %v546_v61, %v546_v61  ;;  %v670_v6 = vrot.slane %v546_v61, %v1360_v11  ;;  %v1052_v26 = vcombine.low %v1030_v2, %v1037_v60  ;;  %v1023_v17 = vcombine.low %v958_v56, %v959_v1 }
  0xea   :  { %v1293_v14 = vpop.f32.mrf.mxu1  ;;  %v1557_v34 = vadd.f32 %v1491_v29, %v644_v54  ;;  %v1561_v35 = vadd.f32 %v1514_v51, %v1521_v55  ;;  %v1564_v36 = vadd.f32 %v1530_v58, %v660_v10  ;;  %v1069_v45 = vcombine.low %v960_v13, %v961_v25 }
  0xeb   :  { %v677_v16 = vrot.slane %v663_v3, %v1360_v11  ;;  %v678_v21 = vcombine.high %v670_v6, %v670_v6  ;;  %v686_v22 = vrot.slane %v670_v6, %v1360_v11  ;;  %v1060_v42 = vrot.slane %v1052_v26, %v1360_v11 }
  0xec   :  { %v549_v15 = vpop.f32.mrf.mxu1  ;;  %v1051_v46 = vrot.slane %v1023_v17, %v1360_v11  ;;  %v1070_v54 = vcombine.low %v962_v27, %v963_v28 }
  0xed   :  { %v679_v23 = vcombine.high %v677_v16, %v677_v16  ;;  %v693_v30 = vrot.slane %v677_v16, %v1360_v11  ;;  %v700_v31 = vrot.slane %v678_v21, %v1360_v11  ;;  %v708_v32 = vcombine.high %v686_v22, %v686_v22 }
  0xee   :  { %v968_v33 = vadd.f32 %v1517_v53, %v686_v22  ;;  %v1294_v37 = vpop.f32.mrf.mxu1  ;;  %v712_v41 = vcombine.high %v549_v15, %v549_v15  ;;  %v719_v62 = vrot.slane %v549_v15, %v1360_v11  ;;  %v1053_v6 = vcombine.low %v1044_v8, %v1051_v46 }
  0xef   :  { %v707_v38 = vrot.slane %v679_v23, %v1360_v11  ;;  %v709_v39 = vcombine.high %v693_v30, %v693_v30  ;;  %v710_v40 = vcombine.high %v700_v31, %v700_v31  ;;  %v969_v49 = vadd.f32 %v1456_v0, %v700_v31 }
  0xf0   :  { %v1124_v44 = vrot.slane %v968_v33, %v1360_v11  ;;  %v554_v48 = vpop.f32.mrf.mxu1  ;;  %v970_v50 = vadd.f32 %v1462_v5, %v708_v32  ;;  %v972_v60 = vadd.f32 %v1482_v20, %v693_v30  ;;  %v1071_v0 = vcombine.low %v1557_v34, %v1561_v35 }
  0xf1   :  { %v971_v52 = vadd.f32 %v1468_v9, %v710_v40  ;;  %v711_v56 = vcombine.high %v707_v38, %v707_v38  ;;  %v973_v1 = vadd.f32 %v1459_v4, %v707_v38  ;;  %v974_v2 = vadd.f32 %v1474_v18, %v709_v39 }
  0xf2   :  { %v1131_v61 = vrot.slane %v1124_v44, %v1360_v11  ;;  %v1297_v63 = vpop.f32.mrf.mxu1  ;;  %v726_v5 = vrot.slane %v712_v41, %v1360_v11  ;;  %v727_v9 = vcombine.high %v719_v62, %v719_v62  ;;  %v735_v20 = vrot.slane %v719_v62, %v1360_v11 }
  0xf3   :  { %v1133_v3 = vcombine.low %v971_v52, %v972_v60  ;;  %v1132_v13 = vcombine.low %v969_v49, %v970_v50  ;;  %v1079_v4 = vrot.slane %v1069_v45, %v1360_v11  ;;  %v975_v22 = vadd.f32 %v1478_v19, %v711_v56 }
  0xf4   :  { %1254 = vst.msk [vmem:[%s1652_s3 + $0x10] sm:$0x1] %vm1253_vm2, %v1131_v61  ;;  %v557_v10 = vpop.f32.mrf.mxu1  ;;  %v728_v18 = vcombine.high %v726_v5, %v726_v5  ;;  %v742_v14 = vrot.slane %v726_v5, %v1360_v11  ;;  %v749_v16 = vrot.slane %v727_v9, %v1360_v11  ;;  %v757_v21 = vcombine.high %v735_v20, %v735_v20 }
  0xf5   :  { %v1067_v25 = vrot.slane %v1053_v6, %v1360_v11  ;;  %v1134_v27 = vcombine.low %v973_v1, %v974_v2  ;;  %v1086_v28 = vrot.slane %v1070_v54, %v1360_v11  ;;  %v1149_v17 = vrot.slane %v1133_v3, %v1360_v11 }
  0xf6   :  { %v1298_v26 = vpop.f32.mrf.mxu1  ;;  %v756_v8 = vrot.slane %v728_v18, %v1360_v11  ;;  %v758_v15 = vcombine.high %v742_v14, %v742_v14  ;;  %v759_v23 = vcombine.high %v749_v16, %v749_v16  ;;  %v976_v30 = vadd.f32 %v1510_v47, %v735_v20 }
  0xf7   :  { %v1068_v31 = vcombine.low %v1060_v42, %v1067_v25  ;;  %v1142_v32 = vrot.slane %v1132_v13, %v1360_v11  ;;  %v977_v19 = vadd.f32 %v1485_v24, %v749_v16  ;;  %v978_v34 = vadd.f32 %v1505_v43, %v757_v21 }
  0xf8   :  { %v760_v33 = vcombine.high %v756_v8, %v756_v8  ;;  %v979_v35 = vadd.f32 %v1526_v57, %v759_v23  ;;  %v980_v37 = vadd.f32 %v1534_v59, %v742_v14  ;;  %v1135_v38 = vcombine.low %v975_v22, %v976_v30 }
  0xf9   :  { %1251 = vst.msk [vmem:[%s1652_s3] sm:$0xff] %vm1250_vm3, %v1068_v31  ;;  %v767_v47 = vrot.slane %v554_v48, %v1360_v11  ;;  %v981_v39 = vadd.f32 %v1491_v29, %v756_v8  ;;  %v982_v40 = vadd.f32 %v1514_v51, %v758_v15  ;;  %v1156_v24 = vrot.slane %v1134_v27, %v1360_v11 }
  0xfa   :  { %v967_v43 = vadd.f32 %v1542_v7, %v662_v12  ;;  %v1164_v57 = vcombine.low %v1142_v32, %v1149_v17  ;;  %v1163_v59 = vrot.slane %v1135_v38, %v1360_v11  ;;  %v1182_v41 = vcombine.low %v979_v35, %v980_v37 }
  0xfb   :  { %v768_v42 = vcombine.high %v767_v47, %v767_v47  ;;  %v1181_v44 = vcombine.low %v977_v19, %v978_v34  ;;  %v775_v45 = vrot.slane %v767_v47, %v1360_v11  ;;  %v983_v46 = vadd.f32 %v1530_v58, %v760_v33 }
  0xfc   :  { %v1072_v29 = vcombine.low %v1564_v36, %v967_v43  ;;  %v1093_v51 = vrot.slane %v1071_v0, %v1360_v11  ;;  %v1101_v48 = vcombine.low %v1079_v4, %v1086_v28  ;;  %v1165_v49 = vcombine.low %v1156_v24, %v1163_v59 }
  0xfd   :  { %v782_v55 = vrot.slane %v768_v42, %v1360_v11  ;;  %v1183_v50 = vcombine.low %v981_v39, %v982_v40  ;;  %v1198_v12 = vrot.slane %v1182_v41, %v1360_v11  ;;  %v984_v52 = vadd.f32 %v1542_v7, %v775_v45 }
  0xfe   :  { %v1100_v54 = vrot.slane %v1072_v29, %v1360_v11  ;;  %v1172_v56 = vrot.slane %v1164_v57, %v1360_v11  ;;  %v1179_v60 = vrot.slane %v1165_v49, %v1360_v11  ;;  %v1191_v36 = vrot.slane %v1181_v44, %v1360_v11 }
  0xff   :  { %v985_v58 = vadd.f32 %v1517_v53, %v782_v55  ;;  %v1184_v62 = vcombine.low %v983_v46, %v984_v52  ;;  %v1109_v63 = vrot.slane %v1101_v48, %v1360_v11  ;;  %v1205_v5 = vrot.slane %v1183_v50, %v1360_v11 }
 0x100   :  { %v1102_v61 = vcombine.low %v1093_v51, %v1100_v54  ;;  %v1180_v1 = vcombine.low %v1172_v56, %v1179_v60  ;;  %v1213_v0 = vcombine.low %v1191_v36, %v1198_v12 }
 0x101   :  { %v1236_v2 = vrot.slane %v985_v58, %v1360_v11  ;;  %v1212_v3 = vrot.slane %v1184_v62, %v1360_v11 }
 0x102   :  { %v1116_v7 = vrot.slane %v1102_v61, %v1360_v11  ;;  %1255 = vst.msk [vmem:[%s1652_s3 + $0x18] sm:$0xff] %vm1250_vm3, %v1180_v1  ;;  %v1221_v6 = vrot.slane %v1213_v0, %v1360_v11 }
 0x103   :  { %v1243_v53 = vrot.slane %v1236_v2, %v1360_v11  ;;  %v1214_v20 = vcombine.low %v1205_v5, %v1212_v3 }
 0x104   :  { %v1117_v9 = vcombine.low %v1109_v63, %v1116_v7 }
 0x105   :  { %1257 = vst.msk [vmem:[%s1652_s3 + $0x28] sm:$0x1] %vm1253_vm2, %v1243_v53  ;;  %v1228_v10 = vrot.slane %v1214_v20, %v1360_v11 }
 0x106   :  { %1252 = vst.msk [vmem:[%s1652_s3 + $0x8] sm:$0xff] %vm1250_vm3, %v1117_v9 }
 0x107   :  { %v1229_v13 = vcombine.low %v1221_v6, %v1228_v10 }
 0x109   :  { %1256 = vst.msk [vmem:[%s1652_s3 + $0x20] sm:$0xff] %vm1250_vm3, %v1229_v13 }

// kernel: teacher_vit_forward.3
= control target key start
LH: loop header
LB: loop body
LE: loop exit
PB: predicated region body
PF: predicated region fallthrough
CT: control target
= control target key end

     0   :  { %s3142_s0 = inlined_call_operand.vmem [shape: f32[2,17,32], index: 0, kind: input, shape index: {}]   ;;  %s3143_s1 = inlined_call_operand.vmem [shape: f32[2,1,32], index: 1, kind: input, shape index: {}]   ;;  %s3144_s2 = inlined_call_operand.vmem [shape: f32[2,1,32], index: 2, kind: input, shape index: {}]   ;;  %s3145_s3 = inlined_call_operand.vmem [shape: bf16[2,32,96], index: 3, kind: input, shape index: {}]   ;;  %s3146_s4 = inlined_call_operand.vmem [shape: f32[2,1,96], index: 4, kind: input, shape index: {}]   ;;  %s3147_s5 = inlined_call_operand.vmem [shape: bf16[2,32,32], index: 5, kind: input, shape index: {}]   ;;  %s3148_s6 = inlined_call_operand.vmem [shape: f32[2,1,32], index: 6, kind: input, shape index: {}]   ;;  %s3149_s7 = inlined_call_operand.vmem [shape: f32[2,1,32], index: 7, kind: input, shape index: {}]   ;;  %s3150_s8 = inlined_call_operand.vmem [shape: f32[2,1,32], index: 8, kind: input, shape index: {}]   ;;  %s3151_s9 = inlined_call_operand.vmem [shape: bf16[2,32,64], index: 9, kind: input, shape index: {}]   ;;  %s3152_s10 = inlined_call_operand.vmem [shape: f32[2,1,64], index: 10, kind: input, shape index: {}]   ;;  %s3153_s11 = inlined_call_operand.vmem [shape: bf16[2,64,32], index: 11, kind: input, shape index: {}]   ;;  %s3154_s12 = inlined_call_operand.vmem [shape: f32[2,1,32], index: 12, kind: input, shape index: {}]   ;;  %s3155_s13 = inlined_call_operand.vmem [shape: f32[1,32], index: 13, kind: input, shape index: {}]   ;;  %s3156_s14 = inlined_call_operand.vmem [shape: f32[1,32], index: 14, kind: input, shape index: {}]   ;;  %s3157_s15 = inlined_call_operand.hbm [shape: f32[2,1,32], index: 15, kind: output, shape index: {}]  }
   0x1   :  { %3171 = sst [smem:[#allocation18_spill]] %s3142_s0 }
   0x2   :  { %3172 = sst [smem:[#allocation19_spill]] %s3143_s1 }
   0x3   :  { %3173 = sst [smem:[#allocation20_spill]] %s3145_s3 }
   0x4   :  { %3174 = sst [smem:[#allocation21_spill]] %s3147_s5 }
   0x5   :  { %3175 = sst [smem:[#allocation22_spill]] %s3155_s13 }
   0x6   :  { %3176 = sst [smem:[#allocation23_spill]] %s3156_s14 }
   0x7   :  { %3177 = sst [smem:[#allocation24_spill]] %s3157_s15 }
   0x8   :  { %20 = vsyncpa [#allocation4], 0 }
   0x9   :  { %22 = vsyncpa [#allocation4 + $0x1], 0  ;;  %s2727_s18 = smov 0   ;;  %s2729_s19 = smov 0  }
   0xa   :  { %s2731_s20 = smov 0   ;;  %s2733_s21 = smov 0  }
   0xb   :  { %s2735_s22 = smov 0   ;;  %s2737_s23 = smov 0  }
   0xc   :  { %s2739_s24 = smov 0   ;;  %s2741_s25 = smov 0  }
   0xd LB: > { %3178 = sst [smem:[#allocation6_spill]] %s2601_s18  ;;  %s2134_s26 = sadd.s32 4294967295, %s2629_s25   ;;  %s2629_s25 = sphi %s2741_s25, %s28_s25   ;;  %s2625_s24 = sphi %s2739_s24, %s3219_s24   ;;  %s2621_s23 = sphi %s2737_s23, %s3218_s23   ;;  %s2617_s22 = sphi %s2735_s22, %s3217_s22   ;;  %s2613_s21 = sphi %s2733_s21, %s3216_s21   ;;  %s2609_s20 = sphi %s2731_s20, %s3215_s20   ;;  %s2605_s19 = sphi %s2729_s19, %s3221_s19   ;;  %s2601_s18 = sphi %s2727_s18, %s3220_s18  }
   0xe   : > { %3179 = sst [smem:[#allocation7_spill]] %s2609_s20  ;;  %s2135_s27 = sadd.s32 4294967294, %s2629_s25  }
   0xf   : > { %3180 = sst [smem:[#allocation8_spill]] %s2613_s21  ;;  %s37_s28 = sadd.s32 1, %s2621_s23 }
  0x10   : > { %3181 = sst [smem:[#allocation9_spill]] %s2617_s22  ;;  %p38_p0 = scmp.ge.s32.totalorder %s37_s28, 2 }
  0x11   : > { %3182 = sst [smem:[#allocation10_spill]] %s2621_s23  ;;  %s40_s29 = sadd.s32 1, %s2625_s24 }
  0x12   : > { %3183 = sst [smem:[#allocation11_spill]] %s2625_s24  ;;  %p437_p1 = scmp.ne.s32.totalorder %s2609_s20, %s2605_s19 }
  0x13   : > { %3184 = sst [smem:[#allocation12_spill]] %s2629_s25  ;;  %p438_p2 = scmp.eq.s32.totalorder %s2134_s26, 3 }
  0x14   : > { %s3223_s28 = smov (%p38_p0, %s37_s28), 0  ;;  %s3225_s29 = smov (!%p38_p0, %s40_s29), %s2625_s24 }
  0x15   : > { %3185 = sst [smem:[#allocation13_spill]] %s3223_s28  ;;  %p2776_p3 = por %p438_p2, %p437_p1 }
  0x16   : > { %p443_p4 = scmp.ne.s32.totalorder %s2605_s19, %s2601_s18  ;;  %p42_p5 = scmp.ge.s32.totalorder %s3225_s29, 2 }
  0x17   : > { %s3186_s30 = scalar_select %p2776_p3, 1, 0 }
  0x18   : > { %p444_p6 = scmp.eq.s32.totalorder %s2135_s27, 3  ;;  %p2138_p7 = scmp.ge.s32.totalorder %s2629_s25, 1 }
  0x19   : > { %3187 = sst [smem:[#allocation14_spill]] %s3186_s30  ;;  %p556_p8 = scmp.lt.s32.totalorder %s2629_s25, 5 }
  0x1a   : > { %s3227_s29 = smov (%p42_p5, %s3225_s29), 0  ;;  %p2786_p9 = por %p444_p6, %p443_p4 }
  0x1b   : > { %3188 = sst [smem:[#allocation15_spill]] %s3227_s29  ;;  %p557_p10 = pnand %p2138_p7, %p556_p8 }
  0x1c   : > { %s3189_s16 = scalar_select %p2786_p9, 1, 0 }
  0x1d   : > { %s424_s17 = ssub.s32 %s2625_s24, %s3227_s29  ;;  %s427_s26 = sadd.s32 1, %s2609_s20 }
  0x1e   : > { %3190 = sst [smem:[#allocation16_spill]] %s3189_s16  ;;  %p425_p11 = scmp.eq.s32.totalorder %s424_s17, 0 }
  0x1f   : > { %560 = sbr.rel (%p557_p10) target bundleno = 4424 (0x1148), region = 80  ;;  %p647_p12 = scmp.lt.s32.totalorder (!%p557_p10), %s2617_s22, 1 }
  0x20   : > { %s2794_s28 = scalar_select %p425_p11, %s2609_s20, %s427_s26  }
  0x21   : > { %p652_p13 = scmp.lt.s32.totalorder (!%p557_p10), %s2613_s21, 1  ;;  %s3193_s0 = sld [smem:[#allocation18_spill]] (!%p557_p10) }
  0x22   : > { %3191 = sst [smem:[#allocation17_spill]] %s2794_s28  ;;  %s3196_s14 = sand.u32 (!%p557_p10), 1, %s2605_s19  }
  0x23   : > { %s3194_s3 = sld [smem:[#allocation20_spill]] (!%p557_p10) }
  0x24   : > { %s648_s23 = scalar_select %p647_p12, %s2617_s22, 1 }
  0x25   : > { %s2801_s18 = scalar_select %p652_p13, %s2613_s21, 1 }
  0x26   : > { %s2357_s17 = smul.u32 24, %s648_s23  ;;  %s3195_s5 = sld [smem:[#allocation21_spill]] }
  0x27   : > { %s2195_s30 = sshll.u32 %s2801_s18, 4  ;;  %s687_s29 = scalar_lea.vmem %s3152_s10, %s2801_s18 }
  0x28   : > { %s651_s15 = scalar_lea.vmem %s3193_s0, %s2357_s17  ;;  %s679_s0 = scalar_lea.vmem %s3150_s8, %s2801_s18 }
  0x29   : > { %s2818_s13 = scalar_lea.vmem %s3194_s3, %s2195_s30  ;;  %s2844_s23 = scalar_lea.vmem %s3151_s9, %s2195_s30 }
  0x2a   : > { %s695_s25 = scalar_lea.vmem %s3154_s12, %s2801_s18  ;;  %s2862_s22 = scalar_lea.vmem [#allocation3], %s3196_s14 }
  0x2b   : > { %s3197_s3 = sld [smem:[#allocation8_spill]] }
  0x2c   : > { %s2827_s1 = scalar_lea.vmem %s3195_s5, %s2195_s30  ;;  %s2198_s5 = sshll.u32 %s2801_s18, 5 }
  0x2d   : > { %s2858_s20 = scalar_lea.vmem %s3153_s11, %s2198_s5 }
  0x31   : > { %p2148_p0 = scmp.ne.s32.totalorder %s3197_s3, 0 }
  0x33   : > { %700 = sbr.rel (%p2148_p0) target bundleno = 59 (0x3b), region = 84 }
  0x38   : > { %v701_v0 = vld [vmem:[%s651_s15] sm:$0xff]  ;;  %vm704_vm0 = vcmask 261120   ;;  %v702_v1 = vld [vmem:[%s651_s15 + $0x8] sm:$0xff]  ;;  %v703_v2 = vld [vmem:[%s651_s15 + $0x10] sm:$0x1]  ;;  %vm707_vm1 = vcmask 253952  }
  0x39   : > { %705 = vst.msk [vmem:[#allocation2] sm:$0xff] %vm704_vm0, %v701_v0  ;;  %706 = vst.msk [vmem:[#allocation2 + $0x8] sm:$0xff] %vm704_vm0, %v702_v1 }
  0x3a   : > { %708 = vst.msk [vmem:[#allocation2 + $0x10] sm:$0x1] %vm707_vm1, %v703_v2 }
  0x3b PF: > { %vm714_vm2 = vcmask 261120   ;;  %vm721_vm3 = vcmask 253952   ;;  %v2459_v24 = vld [vmem:[%s2818_s13 + $0x8] sm:$0xff]   ;;  %v2460_v25 = vld [vmem:[%s2818_s13] sm:$0xff]   ;;  %s3198_s15 = sld [smem:[#allocation19_spill]]  ;;  %s3200_s26 = scalar_lea.vmem %s3144_s2, %s2801_s18  ;;  %vm869_vm4 = vcmask 64512  }
  0x3c   : > { %2249 = vmatprep.subr.bf16.mxu0 %v2459_v24  ;;  %v2150_v43 = vld [vmem:[%s3200_s26] ss:$0 sm:$0xff]  ;;  %s3201_s16 = scalar_lea.vmem %s3146_s4, %s2801_s18  ;;  %s2631_s17 = smov 96   ;;  %vm930_vm5 = vcmask 138240   ;;  %vm937_vm6 = vcmask 131072   ;;  %vm978_vm7 = vcmask 1040384  }
  0x3d   : > { %2250 = vmatpush3.bf16.msra.mxu0 %v2459_v24  ;;  %v2155_v51 = vld [vmem:[%s3201_s16] ss:$0 sm:$0xff]  ;;  %s2632_s14 = smov 64   ;;  %s2633_s3 = smov 120   ;;  %vm1568_vm8 = vcmask 130048   ;;  %vm1572_vm9 = vcmask 195584  }
  0x3e   : > { %2251 = vmatprep.subr.bf16.mxu0 %v2460_v25  ;;  %s2634_s5 = smov 88   ;;  %s2636_s13 = smov 56   ;;  %vm1852_vm10 = vcmask 523264  }
  0x3f   : > { %s2639_s21 = smov 48   ;;  %s2640_s27 = smov 72  }
  0x40   : > { %v2865_v3 = vld [vmem:[#allocation2] sm:$0xff]  ;;  %v2869_v5 = vld [vmem:[#allocation2 + $0x8] sm:$0xff]  ;;  %s2641_s26 = smov 104   ;;  %s2642_s24 = smov 40  }
  0x41   : > { %v2867_v4 = vld [vmem:[#allocation2 + $0x10] sm:$0x1]  ;;  %v715_v6 = vsel %vm714_vm2, %v2865_v3, 0.0  ;;  %v718_v8 = vsel %vm714_vm2, %v2869_v5, 0.0  ;;  %2252 = vmatpush3.bf16.msra.mxu0 %v2460_v25  ;;  %s3199_s30 = scalar_lea.vmem %s3198_s15, %s2801_s18  ;;  %s2637_s15 = smov 80  }
  0x42   : > { %v722_v7 = vsel %vm721_vm3, %v2867_v4, 0.0  ;;  %716 = vadd.xlane.f32.xlu0 %v715_v6  ;;  %v2149_v37 = vld [vmem:[%s3199_s30] ss:$0 sm:$0xff]  ;;  %s2638_s30 = smov 112   ;;  %s2643_s28 = smov 8  }
  0x43   : > { %723 = vadd.xlane.f32.xlu1 %v722_v7  ;;  %s2644_s16 = smov 16  }
  0x46   : > { %719 = vadd.xlane.f32.xlu0 %v718_v8 }
  0xcb   : > { %v717_v9 = vpop.xlane.xlu0 %716 }
  0xcc   : > { %v724_v10 = vpop.xlane.xlu1 %723  ;;  %v726_v11 = vmul.f32 0.03125, %v717_v9 }
  0xcd   : > { %v728_v12 = vmul.f32 0.03125, %v724_v10 }
  0xce   : > { %v729_v13 = vsub.f32 %v2865_v3, %v726_v11 }
  0xcf   : > { %v731_v14 = vsub.f32 %v2867_v4, %v728_v12  ;;  %v720_v15 = vpop.xlane.xlu0 %719 }
  0xd0   : > { %v727_v16 = vmul.f32 0.03125, %v720_v15  ;;  %v732_v17 = vmul.f32 %v729_v13, %v729_v13 }
  0xd1   : > { %v734_v18 = vmul.f32 %v731_v14, %v731_v14 }
  0xd2   : > { %v730_v19 = vsub.f32 %v2869_v5, %v727_v16  ;;  %v735_v20 = vsel %vm714_vm2, %v732_v17, 0.0 }
  0xd3   : > { %736 = vadd.xlane.f32.xlu1 %v735_v20  ;;  %v741_v21 = vsel %vm721_vm3, %v734_v18, 0.0 }
  0xd4   : > { %v733_v22 = vmul.f32 %v730_v19, %v730_v19 }
  0xd6   : > { %v738_v23 = vsel %vm714_vm2, %v733_v22, 0.0 }
  0xd7   : > { %742 = vadd.xlane.f32.xlu1 %v741_v21  ;;  %739 = vadd.xlane.f32.xlu0 %v738_v23 }
 0x15c   : > { %v737_v26 = vpop.xlane.xlu1 %736 }
 0x15d   : > { %v744_v27 = vmul.f32 0.03125, %v737_v26 }
 0x15f   : > { %v747_v28 = vadd.f32 1e-12, %v744_v27 }
 0x160   : > { %v743_v29 = vpop.xlane.xlu1 %742  ;;  %v740_v30 = vpop.xlane.xlu0 %739 }
 0x161   : > { %2469 = vrsqrt.f32 %v747_v28  ;;  %v746_v31 = vmul.f32 0.03125, %v743_v29  ;;  %v745_v32 = vmul.f32 0.03125, %v740_v30 }
 0x163   : > { %v749_v33 = vadd.f32 1e-12, %v746_v31  ;;  %v748_v34 = vadd.f32 1e-12, %v745_v32  ;;  %v2635_v32 = vmov 0  }
 0x165   : > { %2471 = vrsqrt.f32 %v749_v33  ;;  %v2932_v33 = vsel %vm978_vm7, 65535, %v2635_v32 }
 0x166   : > { %2473 = vrsqrt.f32 %v748_v34 }
 0x16e   : > { %v2470_v35 = vpop.eup %2469 }
 0x16f   : > { %v753_v36 = vmul.f32 %v2470_v35, %v729_v13 }
 0x171   : > { %v762_v42 = vmul.f32 %v2149_v37, %v753_v36 }
 0x172   : > { %v2472_v38 = vpop.eup %2471 }
 0x173   : > { %v2474_v39 = vpop.eup %2473  ;;  %v755_v40 = vmul.f32 %v2472_v38, %v731_v14  ;;  %v771_v47 = vadd.f32 %v2150_v43, %v762_v42 }
 0x174   : > { %v754_v41 = vmul.f32 %v2474_v39, %v730_v19 }
 0x175   : > { %v764_v44 = vmul.f32 %v2149_v37, %v755_v40 }
 0x176   : > { %v763_v45 = vmul.f32 %v2149_v37, %v754_v41 }
 0x177   : > { %v773_v46 = vadd.f32 %v2150_v43, %v764_v44 }
 0x178   : > { %v772_v48 = vadd.f32 %v2150_v43, %v763_v45 }
 0x179   : > { %v779_v49 = vpack.c.bf16 %v773_v46, %v773_v46 }
 0x17a   : > { %v778_v50 = vpack.c.bf16 %v772_v48, %v771_v47 }
 0x17c   : > { %2253 = vmatprep.mubr.msk.bf16.mxu0 %vm714_vm2, %v778_v50 }
 0x17d   : > { %2254 = vmatmul.mubr.msk.bf16.vlgmr.msra.gmra.mxu0 %vm714_vm2, %v779_v49 }
 0x23d   : > { %v2255_v52 = vpop.f32.mrf.mxu0 }
 0x23e   : > { %v855_v53 = vadd.f32 %v2255_v52, %v2155_v51 }
 0x23f   : > { %v832_v54 = vpop.f32.mrf.mxu0 }
 0x240   : > { %v2902_v55 = vpack.c.bf16 %v855_v53, %v855_v53  ;;  %v853_v57 = vadd.f32 %v2155_v51, %v832_v54  ;;  %v858_v7 = vmul.f32 0.35355338, %v855_v53 }
 0x241   : > { %v2256_v56 = vpop.f32.mrf.mxu0 }
 0x242   : > { %867 = vrot.lane.b32.xlu0 %v2902_v55, %s2631_s17  ;;  %v856_v60 = vmul.f32 0.35355338, %v853_v57  ;;  %v2916_v8 = vpack.c.bf16 %v858_v7, %v858_v7 }
 0x243   : > { %v835_v58 = vpop.f32.mrf.mxu0 }
 0x244   : > { %v854_v59 = vadd.f32 %v2155_v51, %v835_v58 }
 0x246   : > { %v857_v61 = vmul.f32 0.35355338, %v854_v59  ;;  %v2905_v62 = vpack.c.bf16 %v854_v59, %v853_v57 }
 0x248   : > { %v2907_v63 = vpack.c.bf16 %v857_v61, %v856_v60  ;;  %865 = vrot.lane.b32.xlu1 %v2905_v62, %s2631_s17  ;;  %s2645_s17 = smov 24  }
 0x24a   : > { %2261 = vmatprep.mubr.msk.bf16.mxu1 %vm869_vm4, %v2907_v63 }
 0x2b4   : > { %v868_v0 = vpop.permute.xlu0 %867 }
 0x2b5   : > { %2349 = vmatprep.subr.msk.bf16.mxu1 %vm869_vm4, %v868_v0  ;;  %v880_v1 = vsel %vm869_vm4, %v868_v0, 0 }
 0x2b6   : > { %2258 = vmatpush3.bf16.xpose.msra.mxu1 %v880_v1 }
 0x2ba   : > { %v866_v2 = vpop.permute.xlu1 %865 }
 0x2bb   : > { %2350 = vmatprep.subr.msk.bf16.mxu1 %vm869_vm4, %v866_v2  ;;  %v877_v6 = vsel %vm869_vm4, %v866_v2, 0 }
 0x2be   : > { %2260 = vmatpush3.bf16.xpose.msra.mxu1 %v877_v6 }
 0x2c5   : > { %2262 = vmatmul.mubr.msk.bf16.vlgmr.msra.gmra.mxu1 %vm869_vm4, %v2916_v8 }
 0x385   : > { %v2263_v9 = vpop.f32.mrf.mxu1 }
 0x386   : > { %v938_v15 = vsel %vm937_vm6, %v2263_v9, -inf }
 0x387   : > { %v916_v10 = vpop.f32.mrf.mxu1 }
 0x388   : > { %v931_v11 = vsel %vm930_vm5, %v916_v10, -inf }
 0x389   : > { %932 = vmax.xlane.f32.xlu1 %v931_v11  ;;  %v2264_v12 = vpop.f32.mrf.mxu1 }
 0x38b   : > { %v919_v13 = vpop.f32.mrf.mxu1 }
 0x38c   : > { %v934_v14 = vsel %vm930_vm5, %v919_v13, -inf }
 0x38d   : > { %935 = vmax.xlane.f32.xlu0 %v934_v14 }
 0x391   : > { %939 = vmax.xlane.f32.xlu0 %v938_v15 }
 0x412   : > { %v933_v16 = vpop.xlane.xlu1 %932 }
 0x413   : > { %v941_v19 = vsub.f32 %v916_v10, %v933_v16 }
 0x415   : > { %v944_v23 = vmul.f32 1.442695, %v941_v19 }
 0x416   : > { %v936_v17 = vpop.xlane.xlu0 %935 }
 0x417   : > { %v942_v18 = vsub.f32 %v919_v13, %v936_v17 }
 0x419   : > { %v946_v20 = vmul.f32 1.442695, %v942_v18 }
 0x41a   : > { %v940_v21 = vpop.xlane.xlu0 %939 }
 0x41b   : > { %2475 = vpow2.f32 %v946_v20  ;;  %v943_v22 = vsub.f32 %v2263_v9, %v940_v21 }
 0x41d   : > { %v948_v24 = vmul.f32 1.442695, %v943_v22 }
 0x41f   : > { %2477 = vpow2.f32 %v948_v24 }
 0x420   : > { %2479 = vpow2.f32 %v944_v23 }
 0x428   : > { %v2476_v25 = vpop.eup %2475 }
 0x429   : > { %v953_v26 = vsel %vm930_vm5, %v2476_v25, 0.0 }
 0x42a   : > { %954 = vadd.xlane.f32.xlu0 %v953_v26 }
 0x42c   : > { %v2478_v27 = vpop.eup %2477 }
 0x42d   : > { %v956_v28 = vsel %vm937_vm6, %v2478_v27, 0.0  ;;  %v2480_v29 = vpop.eup %2479 }
 0x42e   : > { %957 = vadd.xlane.f32.xlu1 %v956_v28  ;;  %v950_v30 = vsel %vm930_vm5, %v2480_v29, 0.0 }
 0x432   : > { %951 = vadd.xlane.f32.xlu1 %v950_v30 }
 0x440   : > { %969 = vrot.lane.b32.xlu0 %v2902_v55, %s2632_s14 }
 0x443   : > { %967 = vrot.lane.b32.xlu1 %v2905_v62, %s2632_s14 }
 0x444   : > { %1034 = vrot.lane.b32.xlu0 %v2907_v63, %s2633_s3 }
 0x447   : > { %1040 = vrot.lane.b32.xlu1 %v2902_v55, %s2634_s5 }
 0x44b   : > { %1038 = vrot.lane.b32.xlu1 %v2905_v62, %s2634_s5 }
 0x44f   : > { %1036 = vrot.lane.b32.xlu1 %v2916_v8, %s2633_s3  ;;  %s3202_s3 = scalar_lea.vmem %s3148_s6, %s2801_s18 }
 0x4b3   : > { %v955_v31 = vpop.xlane.xlu0 %954 }
 0x4b7   : > { %v958_v34 = vpop.xlane.xlu1 %957  ;;  %v970_v35 = vpop.permute.xlu0 %969 }
 0x4b8   : > { %v982_v36 = vand.u32 %v2932_v33, %v970_v35  ;;  %2481 = vrcp.f32 %v958_v34 }
 0x4b9   : > { %2483 = vrcp.f32 %v955_v31 }
 0x4ba   : > { %2265 = vmatprep.subr.bf16.mxu0 %v982_v36 }
 0x4bb   : > { %v952_v37 = vpop.xlane.xlu1 %951  ;;  %2266 = vmatpush3.bf16.msra.mxu0 %v982_v36  ;;  %v1035_v48 = vpop.permute.xlu0 %1034 }
 0x4bc   : > { %2485 = vrcp.f32 %v952_v37 }
 0x4bf   : > { %v968_v38 = vpop.permute.xlu1 %967 }
 0x4c0   : > { %2267 = vmatprep.subr.bf16.mxu0 %v968_v38 }
 0x4c1   : > { %2268 = vmatpush3.bf16.msra.mxu0 %v968_v38 }
 0x4c3   : > { %v1041_v39 = vpop.permute.xlu1 %1040 }
 0x4c4   : > { %2351 = vmatprep.subr.msk.bf16.mxu0 %vm869_vm4, %v1041_v39  ;;  %v1052_v49 = vsel %vm869_vm4, %v1041_v39, 0 }
 0x4c5   : > { %v2482_v40 = vpop.eup %2481 }
 0x4c6   : > { %v2484_v41 = vpop.eup %2483  ;;  %v964_v43 = vmul.f32 %v2482_v40, %v2478_v27 }
 0x4c7   : > { %v963_v45 = vmul.f32 %v2484_v41, %v2476_v25  ;;  %v1039_v50 = vpop.permute.xlu1 %1038 }
 0x4c8   : > { %v966_v47 = vpack.c.bf16 %v964_v43, %v964_v43  ;;  %v1049_v51 = vsel %vm869_vm4, %v1039_v50, 0 }
 0x4c9   : > { %v2486_v42 = vpop.eup %2485 }
 0x4ca   : > { %v962_v44 = vmul.f32 %v2486_v42, %v2480_v29 }
 0x4cb   : > { %v1037_v52 = vpop.permute.xlu1 %1036 }
 0x4cc   : > { %v965_v46 = vpack.c.bf16 %v963_v45, %v962_v44 }
 0x4ce   : > { %2269 = vmatprep.mubr.msk.bf16.mxu0 %vm930_vm5, %v965_v46 }
 0x4cf   : > { %2270 = vmatmul.mubr.msk.bf16.vlgmr.msra.gmra.mxu0 %vm930_vm5, %v966_v47 }
 0x4d0   : > { %2274 = vmatpush3.bf16.xpose.msra.mxu0 %v1052_v49  ;;  %2277 = vmatprep.mubr.msk.bf16.mxu0 %vm869_vm4, %v1035_v48 }
 0x4d1   : > { %2352 = vmatprep.subr.msk.bf16.mxu0 %vm869_vm4, %v1039_v50 }
 0x4d8   : > { %2276 = vmatpush3.bf16.xpose.msra.mxu0 %v1049_v51 }
 0x4df   : > { %2278 = vmatmul.mubr.msk.bf16.vlgmr.msra.gmra.mxu0 %vm869_vm4, %v1037_v52 }
 0x58f   : > { %v2943_v53 = vpop.f32.mrf.mxu0 }
 0x591   : > { %v2945_v54 = vpop.f32.mrf.mxu0 }
 0x593   : > { %v2272_v56 = vpop.f32.mrf.mxu0 }
 0x595   : > { %v2947_v57 = vpop.f32.mrf.mxu0 }
 0x59f   : > { %v2279_v58 = vpop.f32.mrf.mxu0 }
 0x5a0   : > { %v1108_v1 = vsel %vm937_vm6, %v2279_v58, -inf }
 0x5a1   : > { %v1088_v59 = vpop.f32.mrf.mxu0 }
 0x5a2   : > { %v1102_v60 = vsel %vm930_vm5, %v1088_v59, -inf }
 0x5a3   : > { %1103 = vmax.xlane.f32.xlu0 %v1102_v60  ;;  %v2280_v61 = vpop.f32.mrf.mxu0 }
 0x5a5   : > { %v1091_v0 = vpop.f32.mrf.mxu0 }
 0x5a6   : > { %v1105_v2 = vsel %vm930_vm5, %v1091_v0, -inf }
 0x5a7   : > { %1109 = vmax.xlane.f32.xlu0 %v1108_v1  ;;  %1106 = vmax.xlane.f32.xlu1 %v1105_v2 }
 0x62c   : > { %v1104_v6 = vpop.xlane.xlu0 %1103 }
 0x62d   : > { %v1111_v7 = vsub.f32 %v1088_v59, %v1104_v6 }
 0x62f   : > { %v1114_v9 = vmul.f32 1.442695, %v1111_v7 }
 0x630   : > { %v1110_v10 = vpop.xlane.xlu0 %1109  ;;  %v1107_v11 = vpop.xlane.xlu1 %1106 }
 0x631   : > { %2487 = vpow2.f32 %v1114_v9  ;;  %v1113_v12 = vsub.f32 %v2279_v58, %v1110_v10  ;;  %v1112_v13 = vsub.f32 %v1091_v0, %v1107_v11 }
 0x633   : > { %v1118_v14 = vmul.f32 1.442695, %v1113_v12  ;;  %v1116_v15 = vmul.f32 1.442695, %v1112_v13 }
 0x635   : > { %2489 = vpow2.f32 %v1118_v14 }
 0x636   : > { %2491 = vpow2.f32 %v1116_v15 }
 0x63e   : > { %v2488_v16 = vpop.eup %2487 }
 0x63f   : > { %v1120_v17 = vsel %vm930_vm5, %v2488_v16, 0.0 }
 0x640   : > { %1121 = vadd.xlane.f32.xlu0 %v1120_v17 }
 0x642   : > { %v2490_v18 = vpop.eup %2489 }
 0x643   : > { %v2492_v19 = vpop.eup %2491  ;;  %v1126_v20 = vsel %vm937_vm6, %v2490_v18, 0.0 }
 0x644   : > { %1127 = vadd.xlane.f32.xlu1 %v1126_v20  ;;  %v1123_v21 = vsel %vm930_vm5, %v2492_v19, 0.0 }
 0x645   : > { %1124 = vadd.xlane.f32.xlu0 %v1123_v21 }
 0x655   : > { %1137 = vrot.lane.b32.xlu1 %v2905_v62, %s2636_s13 }
 0x659   : > { %1205 = vrot.lane.b32.xlu1 %v2902_v55, %s2637_s15 }
 0x65b   : > { %1139 = vrot.lane.b32.xlu0 %v2902_v55, %s2636_s13  ;;  %s3203_s13 = scalar_lea.vmem %s3149_s7, %s2801_s18  ;;  %s3204_s18 = sld [smem:[#allocation8_spill]] }
 0x65d   : > { %1203 = vrot.lane.b32.xlu1 %v2905_v62, %s2637_s15 }
 0x65f   : > { %1199 = vrot.lane.b32.xlu0 %v2907_v63, %s2638_s30 }
 0x661   : > { %1201 = vrot.lane.b32.xlu1 %v2916_v8, %s2638_s30  ;;  %p2191_p1 = scmp.ne.s32.totalorder %s3204_s18, 1 }
 0x6c9   : > { %v1122_v22 = vpop.xlane.xlu0 %1121 }
 0x6ca   : > { %2493 = vrcp.f32 %v1122_v22 }
 0x6cd   : > { %v1128_v23 = vpop.xlane.xlu1 %1127 }
 0x6ce   : > { %v1125_v24 = vpop.xlane.xlu0 %1124  ;;  %2495 = vrcp.f32 %v1128_v23 }
 0x6cf   : > { %2497 = vrcp.f32 %v1125_v24 }
 0x6d1   : > { %v1138_v27 = vpop.permute.xlu1 %1137 }
 0x6d2   : > { %v1140_v25 = vpop.permute.xlu0 %1139 }
 0x6d3   : > { %v1149_v26 = vand.u32 %v1140_v25, %v2932_v33 }
 0x6d5   : > { %2281 = vmatprep.subr.bf16.mxu1 %v1149_v26  ;;  %v1206_v29 = vpop.permute.xlu1 %1205 }
 0x6d6   : > { %2282 = vmatpush3.bf16.msra.mxu1 %v1149_v26  ;;  %v1200_v38 = vpop.permute.xlu0 %1199  ;;  %v1217_v39 = vsel %vm869_vm4, %v1206_v29, 0 }
 0x6d7   : > { %2283 = vmatprep.subr.bf16.mxu1 %v1138_v27  ;;  %v2494_v28 = vpop.eup %2493 }
 0x6d8   : > { %v1132_v34 = vmul.f32 %v2494_v28, %v2488_v16 }
 0x6d9   : > { %v1204_v40 = vpop.permute.xlu1 %1203 }
 0x6da   : > { %2284 = vmatpush3.bf16.msra.mxu1 %v1138_v27  ;;  %v1214_v41 = vsel %vm869_vm4, %v1204_v40, 0 }
 0x6db   : > { %v2496_v30 = vpop.eup %2495  ;;  %2353 = vmatprep.subr.msk.bf16.mxu1 %vm869_vm4, %v1206_v29 }
 0x6dc   : > { %v2498_v31 = vpop.eup %2497  ;;  %v1134_v32 = vmul.f32 %v2496_v30, %v2490_v18 }
 0x6dd   : > { %v1133_v35 = vmul.f32 %v2498_v31, %v2492_v19  ;;  %v1202_v42 = vpop.permute.xlu1 %1201 }
 0x6de   : > { %v1136_v36 = vpack.c.bf16 %v1134_v32, %v1134_v32 }
 0x6df   : > { %v1135_v37 = vpack.c.bf16 %v1133_v35, %v1132_v34 }
 0x6e1   : > { %2285 = vmatprep.mubr.msk.bf16.mxu1 %vm930_vm5, %v1135_v37 }
 0x6e2   : > { %2286 = vmatmul.mubr.msk.bf16.vlgmr.msra.gmra.mxu1 %vm930_vm5, %v1136_v36 }
 0x6e3   : > { %2290 = vmatpush3.bf16.xpose.msra.mxu1 %v1217_v39  ;;  %2293 = vmatprep.mubr.msk.bf16.mxu1 %vm869_vm4, %v1200_v38 }
 0x6e4   : > { %2354 = vmatprep.subr.msk.bf16.mxu1 %vm869_vm4, %v1204_v40 }
 0x6eb   : > { %2292 = vmatpush3.bf16.xpose.msra.mxu1 %v1214_v41 }
 0x6f2   : > { %2294 = vmatmul.mubr.msk.bf16.vlgmr.msra.gmra.mxu1 %vm869_vm4, %v1202_v42 }
 0x7a2   : > { %v2970_v43 = vpop.f32.mrf.mxu1 }
 0x7a4   : > { %v2972_v44 = vpop.f32.mrf.mxu1 }
 0x7a6   : > { %v2288_v45 = vpop.f32.mrf.mxu1 }
 0x7a8   : > { %v2974_v46 = vpop.f32.mrf.mxu1 }
 0x7a9   : > { %v2444_v47 = vpack.i.bf16 %v2974_v46, %v2972_v44 }
 0x7b2   : > { %v2295_v48 = vpop.f32.mrf.mxu1 }
 0x7b3   : > { %v1273_v56 = vsel %vm937_vm6, %v2295_v48, -inf }
 0x7b4   : > { %v1253_v49 = vpop.f32.mrf.mxu1 }
 0x7b5   : > { %v1267_v50 = vsel %vm930_vm5, %v1253_v49, -inf }
 0x7b6   : > { %1268 = vmax.xlane.f32.xlu0 %v1267_v50  ;;  %v2296_v51 = vpop.f32.mrf.mxu1 }
 0x7b8   : > { %v1256_v52 = vpop.f32.mrf.mxu1 }
 0x7b9   : > { %v1270_v58 = vsel %vm930_vm5, %v1256_v52, -inf }
 0x7ba   : > { %1274 = vmax.xlane.f32.xlu0 %v1273_v56  ;;  %1271 = vmax.xlane.f32.xlu1 %v1270_v58 }
 0x83f   : > { %v1269_v59 = vpop.xlane.xlu0 %1268 }
 0x840   : > { %v1276_v60 = vsub.f32 %v1253_v49, %v1269_v59 }
 0x842   : > { %v1279_v61 = vmul.f32 1.442695, %v1276_v60 }
 0x843   : > { %v1275_v0 = vpop.xlane.xlu0 %1274  ;;  %v1272_v1 = vpop.xlane.xlu1 %1271 }
 0x844   : > { %2499 = vpow2.f32 %v1279_v61  ;;  %v1278_v2 = vsub.f32 %v2295_v48, %v1275_v0  ;;  %v1277_v6 = vsub.f32 %v1256_v52, %v1272_v1 }
 0x846   : > { %v1283_v7 = vmul.f32 1.442695, %v1278_v2  ;;  %v1281_v9 = vmul.f32 1.442695, %v1277_v6 }
 0x848   : > { %2501 = vpow2.f32 %v1283_v7 }
 0x849   : > { %2503 = vpow2.f32 %v1281_v9 }
 0x851   : > { %v2500_v10 = vpop.eup %2499 }
 0x852   : > { %v1285_v11 = vsel %vm930_vm5, %v2500_v10, 0.0 }
 0x853   : > { %1286 = vadd.xlane.f32.xlu0 %v1285_v11 }
 0x855   : > { %v2502_v12 = vpop.eup %2501 }
 0x856   : > { %v2504_v13 = vpop.eup %2503  ;;  %v1291_v14 = vsel %vm937_vm6, %v2502_v12, 0.0 }
 0x857   : > { %1292 = vadd.xlane.f32.xlu1 %v1291_v14  ;;  %v1288_v15 = vsel %vm930_vm5, %v2504_v13, 0.0 }
 0x858   : > { %1289 = vadd.xlane.f32.xlu0 %v1288_v15 }
 0x868   : > { %1302 = vrot.lane.b32.xlu1 %v2905_v62, %s2639_s21 }
 0x86c   : > { %1370 = vrot.lane.b32.xlu1 %v2902_v55, %s2640_s27 }
 0x86e   : > { %1304 = vrot.lane.b32.xlu0 %v2902_v55, %s2639_s21 }
 0x870   : > { %1368 = vrot.lane.b32.xlu1 %v2905_v62, %s2640_s27 }
 0x872   : > { %1364 = vrot.lane.b32.xlu0 %v2907_v63, %s2641_s26 }
 0x874   : > { %1366 = vrot.lane.b32.xlu1 %v2916_v8, %s2641_s26  ;;  %s3205_s26 = sld [smem:[#allocation22_spill]] (!%p2191_p1) }
 0x8dc   : > { %v1287_v16 = vpop.xlane.xlu0 %1286 }
 0x8dd   : > { %2505 = vrcp.f32 %v1287_v16 }
 0x8e0   : > { %v1293_v17 = vpop.xlane.xlu1 %1292 }
 0x8e1   : > { %v1290_v18 = vpop.xlane.xlu0 %1289  ;;  %2507 = vrcp.f32 %v1293_v17 }
 0x8e2   : > { %2509 = vrcp.f32 %v1290_v18 }
 0x8e4   : > { %v1303_v21 = vpop.permute.xlu1 %1302 }
 0x8e5   : > { %v1305_v19 = vpop.permute.xlu0 %1304 }
 0x8e6   : > { %v1314_v20 = vand.u32 %v1305_v19, %v2932_v33 }
 0x8e8   : > { %2297 = vmatprep.subr.bf16.mxu0 %v1314_v20  ;;  %v1371_v23 = vpop.permute.xlu1 %1370 }
 0x8e9   : > { %2298 = vmatpush3.bf16.msra.mxu0 %v1314_v20  ;;  %v1365_v29 = vpop.permute.xlu0 %1364  ;;  %v1382_v30 = vsel %vm869_vm4, %v1371_v23, 0  ;;  %v2462_v20 = vld [vmem:[%s2827_s1] sm:$0xff]  }
 0x8ea   : > { %2299 = vmatprep.subr.bf16.mxu0 %v1303_v21  ;;  %v2506_v22 = vpop.eup %2505 }
 0x8eb   : > { %v1297_v25 = vmul.f32 %v2506_v22, %v2500_v10 }
 0x8ec   : > { %v1369_v31 = vpop.permute.xlu1 %1368 }
 0x8ed   : > { %2300 = vmatpush3.bf16.msra.mxu0 %v1303_v21  ;;  %v1379_v32 = vsel %vm869_vm4, %v1369_v31, 0 }
 0x8ee   : > { %v2508_v24 = vpop.eup %2507  ;;  %2355 = vmatprep.subr.msk.bf16.mxu0 %vm869_vm4, %v1371_v23 }
 0x8ef   : > { %v2510_v63 = vpop.eup %2509  ;;  %v1299_v8 = vmul.f32 %v2508_v24, %v2502_v12 }
 0x8f0   : > { %v1298_v26 = vmul.f32 %v2510_v63, %v2504_v13  ;;  %v1367_v34 = vpop.permute.xlu1 %1366 }
 0x8f1   : > { %v1301_v27 = vpack.c.bf16 %v1299_v8, %v1299_v8 }
 0x8f2   : > { %v1300_v28 = vpack.c.bf16 %v1298_v26, %v1297_v25 }
 0x8f4   : > { %2301 = vmatprep.mubr.msk.bf16.mxu0 %vm930_vm5, %v1300_v28 }
 0x8f5   : > { %2302 = vmatmul.mubr.msk.bf16.vlgmr.msra.gmra.mxu0 %vm930_vm5, %v1301_v27 }
 0x8f6   : > { %2306 = vmatpush3.bf16.xpose.msra.mxu0 %v1382_v30  ;;  %2309 = vmatprep.mubr.msk.bf16.mxu0 %vm869_vm4, %v1365_v29 }
 0x8f7   : > { %2356 = vmatprep.subr.msk.bf16.mxu0 %vm869_vm4, %v1369_v31 }
 0x8fe   : > { %2308 = vmatpush3.bf16.xpose.msra.mxu0 %v1379_v32 }
 0x905   : > { %2310 = vmatmul.mubr.msk.bf16.vlgmr.msra.gmra.mxu0 %vm869_vm4, %v1367_v34 }
 0x9b5   : > { %v2303_v35 = vpop.f32.mrf.mxu0 }
 0x9b7   : > { %v1350_v36 = vpop.f32.mrf.mxu0 }
 0x9b9   : > { %v2304_v37 = vpop.f32.mrf.mxu0 }
 0x9bb   : > { %v1353_v38 = vpop.f32.mrf.mxu0 }
 0x9bc   : > { %v2449_v39 = vpack.i.bf16 %v1353_v38, %v1350_v36 }
 0x9c5   : > { %v2311_v40 = vpop.f32.mrf.mxu0 }
 0x9c6   : > { %v1438_v49 = vsel %vm937_vm6, %v2311_v40, -inf }
 0x9c7   : > { %v1418_v41 = vpop.f32.mrf.mxu0 }
 0x9c8   : > { %v1432_v42 = vsel %vm930_vm5, %v1418_v41, -inf }
 0x9c9   : > { %1433 = vmax.xlane.f32.xlu0 %v1432_v42  ;;  %v2312_v45 = vpop.f32.mrf.mxu0 }
 0x9cb   : > { %v1421_v48 = vpop.f32.mrf.mxu0 }
 0x9cc   : > { %v1435_v50 = vsel %vm930_vm5, %v1421_v48, -inf }
 0x9cd   : > { %1439 = vmax.xlane.f32.xlu0 %v1438_v49  ;;  %1436 = vmax.xlane.f32.xlu1 %v1435_v50 }
 0xa52   : > { %v1434_v51 = vpop.xlane.xlu0 %1433 }
 0xa53   : > { %v1441_v52 = vsub.f32 %v1418_v41, %v1434_v51 }
 0xa55   : > { %v1444_v56 = vmul.f32 1.442695, %v1441_v52 }
 0xa56   : > { %v1440_v58 = vpop.xlane.xlu0 %1439  ;;  %v1437_v59 = vpop.xlane.xlu1 %1436 }
 0xa57   : > { %2511 = vpow2.f32 %v1444_v56  ;;  %v1443_v60 = vsub.f32 %v2311_v40, %v1440_v58  ;;  %v1442_v61 = vsub.f32 %v1421_v48, %v1437_v59 }
 0xa59   : > { %v1448_v0 = vmul.f32 1.442695, %v1443_v60  ;;  %v1446_v1 = vmul.f32 1.442695, %v1442_v61 }
 0xa5b   : > { %2513 = vpow2.f32 %v1448_v0 }
 0xa5c   : > { %2515 = vpow2.f32 %v1446_v1 }
 0xa64   : > { %v2512_v2 = vpop.eup %2511 }
 0xa65   : > { %v1450_v6 = vsel %vm930_vm5, %v2512_v2, 0.0 }
 0xa66   : > { %1451 = vadd.xlane.f32.xlu0 %v1450_v6 }
 0xa68   : > { %v2514_v7 = vpop.eup %2513 }
 0xa69   : > { %v2516_v9 = vpop.eup %2515  ;;  %v1456_v10 = vsel %vm937_vm6, %v2514_v7, 0.0 }
 0xa6a   : > { %1457 = vadd.xlane.f32.xlu1 %v1456_v10  ;;  %v1453_v11 = vsel %vm930_vm5, %v2516_v9, 0.0 }
 0xa6b   : > { %1454 = vadd.xlane.f32.xlu0 %v1453_v11 }
 0xa7b   : > { %1467 = vrot.lane.b32.xlu1 %v2905_v62, %s2642_s24 }
 0xa7f   : > { %2445 = vrot.lane.b32.xlu1 %v2444_v47, %s2643_s28 }
 0xa81   : > { %1469 = vrot.lane.b32.xlu0 %v2902_v55, %s2642_s24 }
 0xa83   : > { %1536 = vrot.lane.b32.xlu1 %v2970_v43, %s2643_s28 }
 0xa85   : > { %2450 = vrot.lane.b32.xlu0 %v2449_v39, %s2644_s16 }
 0xa87   : > { %1548 = vrot.lane.b32.xlu1 %v2303_v35, %s2644_s16  ;;  %s3206_s16 = sld [smem:[#allocation23_spill]] (!%p2191_p1) }
 0xaef   : > { %v1452_v12 = vpop.xlane.xlu0 %1451 }
 0xaf0   : > { %2517 = vrcp.f32 %v1452_v12 }
 0xaf3   : > { %v1458_v13 = vpop.xlane.xlu1 %1457 }
 0xaf4   : > { %v1455_v14 = vpop.xlane.xlu0 %1454  ;;  %2519 = vrcp.f32 %v1458_v13 }
 0xaf5   : > { %2521 = vrcp.f32 %v1455_v14 }
 0xaf7   : > { %v1468_v44 = vpop.permute.xlu1 %1467 }
 0xaf8   : > { %v1470_v15 = vpop.permute.xlu0 %1469 }
 0xaf9   : > { %v1479_v62 = vand.u32 %v1470_v15, %v2932_v33  ;;  %v2461_v33 = vld [vmem:[%s2827_s1 + $0x8] sm:$0xff]  }
 0xafb   : > { %2313 = vmatprep.subr.bf16.mxu1 %v1479_v62  ;;  %v2446_v8 = vpop.permute.xlu1 %2445 }
 0xafc   : > { %2314 = vmatpush3.bf16.msra.mxu1 %v1479_v62  ;;  %v2451_v26 = vpop.permute.xlu0 %2450  ;;  %v2448_v27 = vunpack.i.h.bf16 %v2446_v8  ;;  %v2447_v28 = vunpack.i.l.bf16 %v2446_v8 }
 0xafd   : > { %2315 = vmatprep.subr.bf16.mxu1 %v1468_v44  ;;  %v2518_v55 = vpop.eup %2517  ;;  %v2453_v30 = vunpack.i.h.bf16 %v2451_v26  ;;  %v2452_v31 = vunpack.i.l.bf16 %v2451_v26 }
 0xafe   : > { %v1462_v16 = vmul.f32 %v2518_v55, %v2512_v2  ;;  %v1566_v32 = vsel %vm869_vm4, %v2947_v57, %v2448_v27  ;;  %v1565_v34 = vsel %vm869_vm4, %v2945_v54, %v2447_v28 }
 0xaff   : > { %v1537_v25 = vpop.permute.xlu1 %1536  ;;  %v1569_v41 = vsel %vm1568_vm8, %v1565_v34, %v2452_v31  ;;  %v1570_v42 = vsel %vm1568_vm8, %v1566_v32, %v2453_v30  ;;  %v2178_v31 = vld [vmem:[%s679_s0] ss:$0 sm:$0xff] }
 0xb00   : > { %2316 = vmatpush3.bf16.msra.mxu1 %v1468_v44  ;;  %v1567_v36 = vsel %vm869_vm4, %v2943_v53, %v1537_v25  ;;  %v2172_v53 = vld [vmem:[%s3202_s3] ss:$0 sm:$0xff] }
 0xb01   : > { %v2520_v43 = vpop.eup %2519  ;;  %2321 = vmatprep.subr.bf16.mxu1 %v2461_v33  ;;  %v2177_v25 = vld [vmem:[%s3203_s13] ss:$0 sm:$0xff] }
 0xb02   : > { %v2522_v46 = vpop.eup %2521  ;;  %v1464_v47 = vmul.f32 %v2520_v43, %v2514_v7 }
 0xb03   : > { %v1463_v17 = vmul.f32 %v2522_v46, %v2516_v9  ;;  %v1549_v29 = vpop.permute.xlu1 %1548 }
 0xb04   : > { %v1466_v18 = vpack.c.bf16 %v1464_v47, %v1464_v47  ;;  %v1571_v38 = vsel %vm1568_vm8, %v1567_v36, %v1549_v29  ;;  %v2463_v47 = vld [vmem:[%s2844_s23 + $0x8] sm:$0xff]  }
 0xb05   : > { %v1465_v19 = vpack.c.bf16 %v1463_v17, %v1462_v16  ;;  %v2464_v16 = vld [vmem:[%s2844_s23] sm:$0xff]   ;;  %2329 = vmatprep.subr.bf16.mxu0 %v2463_v47 }
 0xb06   : > { %2330 = vmatpush3.bf16.msra.mxu0 %v2463_v47 }
 0xb07   : > { %2317 = vmatprep.mubr.msk.bf16.mxu1 %vm930_vm5, %v1465_v19  ;;  %2331 = vmatprep.subr.bf16.mxu0 %v2464_v16 }
 0xb08   : > { %2318 = vmatmul.mubr.msk.bf16.vlgmr.msra.gmra.mxu1 %vm930_vm5, %v1466_v18 }
 0xb09   : > { %2322 = vmatpush3.bf16.msra.mxu1 %v2461_v33 }
 0xb0a   : > { %2323 = vmatprep.subr.bf16.mxu1 %v2462_v20  ;;  %2332 = vmatpush3.bf16.msra.mxu0 %v2464_v16 }
 0xb0d   : > { %2324 = vmatpush3.bf16.msra.mxu1 %v2462_v20 }
 0xbc8   : > { %v2319_v21 = vpop.f32.mrf.mxu1 }
 0xbc9   : > { %1560 = vrot.lane.b32.xlu1 %v2319_v21, %s2645_s17 }
 0xbca   : > { %v1515_v22 = vpop.f32.mrf.mxu1 }
 0xbcc   : > { %v2320_v23 = vpop.f32.mrf.mxu1 }
 0xbce   : > { %v1518_v24 = vpop.f32.mrf.mxu1 }
 0xbcf   : > { %v2454_v63 = vpack.i.bf16 %v1518_v24, %v1515_v22 }
 0xbd1   : > { %2455 = vrot.lane.b32.xlu0 %v2454_v63, %s2645_s17 }
 0xc3b   : > { %v1561_v35 = vpop.permute.xlu1 %1560 }
 0xc3c   : > { %v1575_v45 = vsel %vm1572_vm9, %v1571_v38, %v1561_v35 }
 0xc3d   : > { %v1581_v50 = vpack.c.bf16 %v1575_v45, %v1575_v45  ;;  %v2468_v45 = vld [vmem:[%s2858_s20] sm:$0xff]  }
 0xc43   : > { %v2456_v37 = vpop.permute.xlu0 %2455 }
 0xc44   : > { %v2458_v39 = vunpack.i.h.bf16 %v2456_v37  ;;  %v2457_v40 = vunpack.i.l.bf16 %v2456_v37 }
 0xc46   : > { %v1573_v48 = vsel %vm1572_vm9, %v1569_v41, %v2457_v40  ;;  %v1574_v49 = vsel %vm1572_vm9, %v1570_v42, %v2458_v39  ;;  %v2465_v40 = vld [vmem:[%s2858_s20 + $0x18] sm:$0xff]   ;;  %v2466_v41 = vld [vmem:[%s2858_s20 + $0x10] sm:$0xff]   ;;  %v2467_v42 = vld [vmem:[%s2858_s20 + $0x8] sm:$0xff]  }
 0xc47   : > { %v1580_v57 = vpack.c.bf16 %v1574_v49, %v1573_v48  ;;  %2337 = vmatprep.subr.bf16.mxu1 %v2465_v40  ;;  %v2179_v48 = vld [vmem:[%s687_s29] ss:$0 sm:$0xff] }
 0xc49   : > { %2325 = vmatprep.mubr.msk.bf16.mxu1 %vm714_vm2, %v1580_v57 }
 0xc4a   : > { %2326 = vmatmul.mubr.msk.bf16.vlgmr.msra.gmra.mxu1 %vm714_vm2, %v1581_v50 }
 0xc4b   : > { %2338 = vmatpush3.bf16.msra.mxu1 %v2465_v40 }
 0xc4c   : > { %2339 = vmatprep.subr.bf16.mxu1 %v2466_v41 }
 0xc4f   : > { %2340 = vmatpush3.bf16.msra.mxu1 %v2466_v41 }
 0xc50   : > { %2341 = vmatprep.subr.bf16.mxu1 %v2467_v42 }
 0xc53   : > { %2342 = vmatpush3.bf16.msra.mxu1 %v2467_v42 }
 0xc54   : > { %2343 = vmatprep.subr.bf16.mxu1 %v2468_v45 }
 0xc57   : > { %2344 = vmatpush3.bf16.msra.mxu1 %v2468_v45 }
 0xd0a   : > { %v2327_v54 = vpop.f32.mrf.mxu1 }
 0xd0b   : > { %v1650_v52 = vadd.f32 %v2327_v54, %v2172_v53 }
 0xd0c   : > { %v1641_v51 = vpop.f32.mrf.mxu1 }
 0xd0d   : > { %v1642_v56 = vadd.f32 %v2172_v53, %v1641_v51  ;;  %v3033_v61 = vadd.f32 %v1650_v52, %v2867_v4 }
 0xd0e   : > { %v2328_v58 = vpop.f32.mrf.mxu1 }
 0xd0f   : > { %v3030_v59 = vadd.f32 %v1642_v56, %v2865_v3  ;;  %v1666_v7 = vsel %vm721_vm3, %v3033_v61, 0.0 }
 0xd10   : > { %v1644_v60 = vpop.f32.mrf.mxu1 }
 0xd11   : > { %v1645_v0 = vadd.f32 %v2172_v53, %v1644_v60  ;;  %v1660_v1 = vsel %vm714_vm2, %v3030_v59, 0.0 }
 0xd12   : > { %1661 = vadd.xlane.f32.xlu0 %v1660_v1 }
 0xd13   : > { %v3038_v2 = vadd.f32 %v1645_v0, %v2869_v5 }
 0xd15   : > { %v1663_v6 = vsel %vm714_vm2, %v3038_v2, 0.0 }
 0xd16   : > { %1664 = vadd.xlane.f32.xlu1 %v1663_v6  ;;  %1667 = vadd.xlane.f32.xlu0 %v1666_v7 }
 0xd9b   : > { %v1662_v3 = vpop.xlane.xlu0 %1661 }
 0xd9c   : > { %v1669_v9 = vmul.f32 0.03125, %v1662_v3 }
 0xd9e   : > { %v1672_v4 = vsub.f32 %v3030_v59, %v1669_v9 }
 0xd9f   : > { %v1665_v10 = vpop.xlane.xlu1 %1664  ;;  %v1668_v11 = vpop.xlane.xlu0 %1667 }
 0xda0   : > { %v1670_v12 = vmul.f32 0.03125, %v1665_v10  ;;  %v1671_v13 = vmul.f32 0.03125, %v1668_v11  ;;  %v1675_v5 = vmul.f32 %v1672_v4, %v1672_v4 }
 0xda2   : > { %v1673_v14 = vsub.f32 %v3038_v2, %v1670_v12  ;;  %v1674_v15 = vsub.f32 %v3033_v61, %v1671_v13  ;;  %v1678_v62 = vsel %vm714_vm2, %v1675_v5, 0.0 }
 0xda3   : > { %1679 = vadd.xlane.f32.xlu0 %v1678_v62  ;;  %v2184_v62 = vld [vmem:[%s695_s25] ss:$0 sm:$0xff] }
 0xda4   : > { %v1676_v44 = vmul.f32 %v1673_v14, %v1673_v14  ;;  %v1677_v55 = vmul.f32 %v1674_v15, %v1674_v15 }
 0xda6   : > { %v1681_v43 = vsel %vm714_vm2, %v1676_v44, 0.0  ;;  %v1684_v46 = vsel %vm721_vm3, %v1677_v55, 0.0 }
 0xda7   : > { %1682 = vadd.xlane.f32.xlu0 %v1681_v43  ;;  %1685 = vadd.xlane.f32.xlu1 %v1684_v46 }
 0xe2c   : > { %v1680_v17 = vpop.xlane.xlu0 %1679 }
 0xe2d   : > { %v1687_v18 = vmul.f32 0.03125, %v1680_v17 }
 0xe2f   : > { %v1690_v19 = vadd.f32 1e-12, %v1687_v18 }
 0xe30   : > { %v1686_v33 = vpop.xlane.xlu1 %1685  ;;  %v1683_v20 = vpop.xlane.xlu0 %1682 }
 0xe31   : > { %2523 = vrsqrt.f32 %v1690_v19  ;;  %v1689_v21 = vmul.f32 0.03125, %v1686_v33  ;;  %v1688_v22 = vmul.f32 0.03125, %v1683_v20 }
 0xe33   : > { %v1692_v23 = vadd.f32 1e-12, %v1689_v21  ;;  %v1691_v24 = vadd.f32 1e-12, %v1688_v22 }
 0xe35   : > { %2525 = vrsqrt.f32 %v1692_v23 }
 0xe36   : > { %2527 = vrsqrt.f32 %v1691_v24 }
 0xe3e   : > { %v2524_v63 = vpop.eup %2523 }
 0xe3f   : > { %v1696_v8 = vmul.f32 %v2524_v63, %v1672_v4 }
 0xe41   : > { %v1705_v30 = vmul.f32 %v2177_v25, %v1696_v8 }
 0xe42   : > { %v2526_v26 = vpop.eup %2525 }
 0xe43   : > { %v2528_v27 = vpop.eup %2527  ;;  %v1698_v28 = vmul.f32 %v2526_v26, %v1674_v15  ;;  %v1714_v36 = vadd.f32 %v2178_v31, %v1705_v30 }
 0xe44   : > { %v1697_v29 = vmul.f32 %v2528_v27, %v1673_v14 }
 0xe45   : > { %v1707_v32 = vmul.f32 %v2177_v25, %v1698_v28 }
 0xe46   : > { %v1706_v34 = vmul.f32 %v2177_v25, %v1697_v29 }
 0xe47   : > { %v1716_v35 = vadd.f32 %v2178_v31, %v1707_v32 }
 0xe48   : > { %v1715_v37 = vadd.f32 %v2178_v31, %v1706_v34 }
 0xe49   : > { %v1722_v38 = vpack.c.bf16 %v1716_v35, %v1716_v35 }
 0xe4a   : > { %v1721_v39 = vpack.c.bf16 %v1715_v37, %v1714_v36 }
 0xe4c   : > { %2333 = vmatprep.mubr.msk.bf16.mxu0 %vm714_vm2, %v1721_v39 }
 0xe4d   : > { %2334 = vmatmul.mubr.msk.bf16.vlgmr.msra.gmra.mxu0 %vm714_vm2, %v1722_v38 }
 0xf0d   : > { %v2335_v49 = vpop.f32.mrf.mxu0 }
 0xf0e   : > { %v1791_v57 = vadd.f32 %v2335_v49, %v2179_v48 }
 0xf0f   : > { %v1782_v50 = vpop.f32.mrf.mxu0 }
 0xf10   : > { %v1801_v54 = vmul.f32 0.70710677, %v1791_v57  ;;  %v1783_v53 = vadd.f32 %v2179_v48, %v1782_v50  ;;  %v1798_v9 = vmul.f32 0.5, %v1791_v57 }
 0xf11   : > { %v2336_v51 = vpop.f32.mrf.mxu0 }
 0xf12   : > { %v1799_v52 = vmul.f32 0.70710677, %v1783_v53  ;;  %2529 = verf.f32 %v1801_v54  ;;  %v1796_v4 = vmul.f32 0.5, %v1783_v53 }
 0xf13   : > { %v1785_v56 = vpop.f32.mrf.mxu0 }
 0xf14   : > { %2531 = verf.f32 %v1799_v52  ;;  %v1786_v58 = vadd.f32 %v2179_v48, %v1785_v56 }
 0xf16   : > { %v1800_v60 = vmul.f32 0.70710677, %v1786_v58  ;;  %v1797_v10 = vmul.f32 0.5, %v1786_v58 }
 0xf18   : > { %2533 = verf.f32 %v1800_v60 }
 0xf1f   : > { %v2530_v0 = vpop.eup %2529 }
 0xf20   : > { %v1807_v6 = vadd.f32 1.0, %v2530_v0 }
 0xf21   : > { %v2532_v1 = vpop.eup %2531 }
 0xf22   : > { %v1805_v7 = vadd.f32 1.0, %v2532_v1  ;;  %v1810_v12 = vmul.f32 %v1807_v6, %v1798_v9 }
 0xf24   : > { %v1808_v13 = vmul.f32 %v1805_v7, %v1796_v4  ;;  %v1820_v15 = vpack.c.bf16 %v1810_v12, %v1810_v12 }
 0xf25   : > { %v2534_v3 = vpop.eup %2533 }
 0xf26   : > { %v1806_v11 = vadd.f32 1.0, %v2534_v3 }
 0xf28   : > { %v1809_v5 = vmul.f32 %v1806_v11, %v1797_v10 }
 0xf2a   : > { %v1819_v14 = vpack.c.bf16 %v1809_v5, %v1808_v13 }
 0xf2c   : > { %2345 = vmatprep.mubr.msk.bf16.mxu1 %vm1852_vm10, %v1819_v14 }
 0xf2d   : > { %2346 = vmatmul.mubr.msk.bf16.vlgmr.msra.gmra.mxu1 %vm1852_vm10, %v1820_v15 }
 0xfed   : > { %v2347_v44 = vpop.f32.mrf.mxu1 }
 0xfee   : > { %v1902_v55 = vadd.f32 %v2347_v44, %v2184_v62 }
 0xfef   : > { %v1893_v43 = vpop.f32.mrf.mxu1 }
 0xff0   : > { %v1909_v46 = vadd.f32 %v1902_v55, %v3033_v61  ;;  %v1894_v47 = vadd.f32 %v2184_v62, %v1893_v43 }
 0xff1   : > { %v2348_v16 = vpop.f32.mrf.mxu1 }
 0xff2   : > { %1912 = vst.msk [vmem:[#allocation2 + $0x10] sm:$0x1] %vm721_vm3, %v1909_v46  ;;  %v1907_v17 = vadd.f32 %v1894_v47, %v3030_v59 }
 0xff3   : > { %v1896_v18 = vpop.f32.mrf.mxu1 }
 0xff4   : > { %1910 = vst.msk [vmem:[#allocation2] sm:$0xff] %vm714_vm2, %v1907_v17  ;;  %v1897_v19 = vadd.f32 %v2184_v62, %v1896_v18  ;;  %1916 = sbr.rel (%p2191_p1) target bundleno = 4398 (0x112e), region = 88 }
 0xff6   : > { %v1908_v33 = vadd.f32 %v1897_v19, %v3038_v2 }
 0xff8   : > { %1911 = vst.msk [vmem:[#allocation2 + $0x8] sm:$0xff] %vm714_vm2, %v1908_v33 }
 0xff9   : > { %v1919_v20 = vsel %vm721_vm3, %v1907_v17, 0.0  ;;  %v1917_v25 = vld [vmem:[%s3205_s26] sm:$0x1] }
 0xffa   : > { %1920 = vadd.xlane.f32.xlu0 %v1919_v20  ;;  %v1918_v27 = vld [vmem:[%s3206_s16] sm:$0x1] }
0x1083   : > { %v1921_v61 = vpop.xlane.xlu0 %1920 }
0x1084   : > { %v1922_v21 = vmul.f32 0.03125, %v1921_v61 }
0x1086   : > { %v1923_v22 = vsub.f32 %v1907_v17, %v1922_v21 }
0x1088   : > { %v1924_v23 = vmul.f32 %v1923_v22, %v1923_v22 }
0x108a   : > { %v1925_v59 = vsel %vm721_vm3, %v1924_v23, 0.0 }
0x108b   : > { %1926 = vadd.xlane.f32.xlu0 %v1925_v59 }
0x1114   : > { %v1927_v24 = vpop.xlane.xlu0 %1926 }
0x1115   : > { %v1928_v63 = vmul.f32 0.03125, %v1927_v24 }
0x1117   : > { %v1929_v8 = vadd.f32 1e-12, %v1928_v63 }
0x1119   : > { %2535 = vrsqrt.f32 %v1929_v8 }
0x1126   : > { %v2536_v2 = vpop.eup %2535 }
0x1127   : > { %v1931_v26 = vmul.f32 %v2536_v2, %v1923_v22 }
0x1129   : > { %v1932_v28 = vmul.f32 %v1931_v26, %v1917_v25 }
0x112b   : > { %v1933_v29 = vadd.f32 %v1932_v28, %v1918_v27 }
0x112d   : > { %1934 = vst.msk [vmem:[%s2862_s22] sm:$0x1] %vm721_vm3, %v1933_v29 }
0x112e PF: > { %s3207_s17 = sld [smem:[#allocation9_spill]]  ;;  %s1948_s15 = sshll.u32 %s2862_s22, 4  ;;  %s1949_s15 = int_to_ptr.vmem [resolvable:$true] %s1948_s15 }
0x112f   : > { %s3209_s5 = sld [smem:[#allocation24_spill]]  ;;  %s3210_s30 = sand.u32 1, %s2605_s19  }
0x1130   : > { %s1936_s0 = scalar_lea.sflag [#allocation4], %s3210_s30  ;;  %s2537_s21 = scalar_lea.vmem %s1949_s15, 16 }
0x1131   : > { %p2538_p2 = scmp.ne.s32.totalorder %s1949_s15, %s2537_s21  ;;  %s2646_s20 = smov [#allocation3]  }
0x1132   : > { %s2541_s29 = sshll.u32 %s2646_s20, 4  ;;  %s2542_s29 = int_to_ptr.vmem [resolvable:$false] %s2541_s29 }
0x1133   : > { %p2539_p4 = pnand %p2538_p2, %p2776_p3  ;;  %s2543_s18 = scalar_lea.vmem %s2542_s29, 32 }
0x1134   : > { %s2192_s14 = sshll.u32 %s3207_s17, 4  ;;  %p2544_p6 = scmp.lt.s32.totalorder %s1949_s15, %s2542_s29 }
0x1135   : > { %s1946_s13 = scalar_lea.hbm %s3209_s5, %s2192_s14  ;;  %p2540_p5 = pneg %p2539_p4 }
0x1136   : > { %p2545_p7 = scmp.lt.s32.totalorder %s2543_s18, %s2537_s21 }
0x1138   : > { %p2546_p8 = por %p2545_p7, %p2544_p6 }
0x113a   : > { %p2547_p10 = pnand %p2546_p8, %p2540_p5 }
0x113c   : > { %2550 = shalt.err (!%p2547_p10)
}
0x113d   : > { %s2551_s25 = scalar_lea.hbm %s1946_s13, 16  ;;  %s2555_s26 = scalar_lea.hbm %s3209_s5, 32 }
0x113e   : > { %p2552_p11 = scmp.ne.s32.totalorder %s1946_s13, %s2551_s25  ;;  %p2556_p0 = scmp.lt.s32.totalorder %s1946_s13, %s3209_s5 }
0x113f   : > { %p2557_p1 = scmp.lt.s32.totalorder %s2555_s26, %s2551_s25 }
0x1140   : > { %p2553_p12 = pnand %p2552_p11, %p2776_p3 }
0x1141   : > { %p2558_p2 = por %p2557_p1, %p2556_p0 }
0x1142   : > { %p2554_p13 = pneg %p2553_p12 }
0x1144   : > { %p2559_p4 = pnand %p2558_p2, %p2554_p13 }
0x1146   : > { %2562 = shalt.err (!%p2559_p4)
}
0x1147   : > { %2358 = dma.vmem_to_hbm [thread:$0]  (%p2776_p3), %s1949_s15, 16, %s1946_s13, %s1936_s0  }
0x1148 PF: > { %s3211_s16 = sld [smem:[#allocation12_spill]] }
0x1149   : > { %s3212_s17 = sld [smem:[#allocation6_spill]] }
0x114e   : > { %p2364_p5 = scmp.ge.s32.totalorder %s3211_s16, 2 }
0x114f   : > { %s1960_s3 = sand.u32 1, %s3212_s17  }
0x1150   : > { %p2361_p6 = pnand %p2364_p5, %p2786_p9  ;;  %s1961_s23 = scalar_lea.sflag [#allocation4], %s1960_s3 }
0x1152   : > { %p2362_p7 = pneg %p2361_p6 }
0x1154   : > { %2596 = dma.done.wait (%p2362_p7), %s1961_s23, 16  }
0x1155   : > { %2598 = vsyncadd (%p2362_p7), %s1961_s23, 4294967280  ;;  %s28_s25 = sadd.s32 1, %s3211_s16   ;;  %s3214_s30 = sld [smem:[#allocation7_spill]] }
0x1156   : > { %p25_p8 = scmp.ge.s32.totalorder %s28_s25, 6   ;;  %s3215_s20 = sld [smem:[#allocation17_spill]] }
0x1157   : > { %s3216_s21 = sld [smem:[#allocation10_spill]]  ;;  %s3220_s18 = smov %s2605_s19 }
0x1158   : > { %s3217_s22 = sld [smem:[#allocation11_spill]]  ;;  %27 = sbr.rel (!%p25_p8) target bundleno = 13 (0xd), region = 159 }
0x1159   : > { %s3218_s23 = sld [smem:[#allocation13_spill]] }
0x115a   : > { %s3219_s24 = sld [smem:[#allocation15_spill]] }
0x115b   : > { %s3221_s19 = smov %s3214_s30 }
0x115d   :  { %1965 = vsyncpa [#allocation4], 1 }
0x115e   :  { %1967 = vsyncpa [#allocation4 + $0x1], 1 }

</bundles_post_ra>
